<compile_context>
chip_gen: v7x
topology: tpu7x:2x2x1
jax: 0.10.0
libtpu: 0.0.40
codegen_flags: <defaults>
</compile_context>

<pallas_src>
import math

import jax
import jax.numpy as jnp
from jax.experimental import pallas as pl
from jax.experimental.pallas import tpu as pltpu

# ----------------------------- hyper-parameters -----------------------------
N_HEAD = 2
N_LAYER = 2
N_NODE = 8
D_NODE = 32
N_AGENT = 3
D_K = 16
D_V = 16
D_HID = 64
PATH_LEN = 8
EPS = 1e-6

_VMEM = pl.BlockSpec(memory_space=pltpu.MemorySpace.VMEM)

_ARG_ORDER = ("wq", "wk", "wv", "wo", "ln1_g", "ln1_b", "w1", "b1", "w2", "b2",
              "ln2_g", "ln2_b", "w_mask", "ln_g", "ln_b",
              "ptr_wq", "ptr_wk", "ptr_wv", "ptr_wo")


# ------------------------------ kernel helpers -------------------------------
def _layer_norm(x, gamma, beta):
    mu = jnp.mean(x, axis=-1, keepdims=True)
    var = jnp.mean((x - mu) ** 2, axis=-1, keepdims=True)
    return (x - mu) * jax.lax.rsqrt(var + EPS) * gamma + beta


def _softmax_lanes(s):
    """Numerically-stable softmax over the last (lane) axis."""
    s = s - jnp.max(s, axis=-1, keepdims=True)
    e = jnp.exp(s)
    return e * pl.reciprocal(jnp.sum(e, axis=-1, keepdims=True), approx=True)


# ------------------------------- fused kernel --------------------------------
def actor_fused_kernel(obs_ref,
                       wq_ref, wk_ref, wv_ref, wo_ref,
                       ln1g_ref, ln1b_ref, w1_ref, b1_ref, w2_ref, b2_ref,
                       ln2g_ref, ln2b_ref,
                       wmask_ref, lng_ref, lnb_ref,
                       pwq_ref, pwk_ref, pwv_ref, pwo_ref,
                       p_ref, logp_ref, ent_ref):
    f32 = jnp.float32
    scale = 1.0 / math.sqrt(D_K)

    x = obs_ref[:N_NODE, :]                       # (n, d)  current agent's nodes
    y = obs_ref[N_NODE:N_NODE * N_AGENT, :]       # (m, d)  neighbor agents' nodes
    x_path = obs_ref[N_NODE * N_AGENT:, :]        # (L, d)  current path

    # ---- cross-attention decoder stack (fully unrolled: 2 layers x 2 heads) ---
    for l in range(N_LAYER):
        attn_out = jnp.zeros((N_NODE, D_NODE), f32)
        for h in range(N_HEAD):
            qh = jnp.dot(x, wq_ref[l, h], preferred_element_type=f32)    # (n,dk)
            kh = jnp.dot(y, wk_ref[l, h], preferred_element_type=f32)    # (m,dk)
            vh = jnp.dot(y, wv_ref[l, h], preferred_element_type=f32)    # (m,dv)
            s = jax.lax.dot_general(qh, kh, (((1,), (1,)), ((), ())),
                                    preferred_element_type=f32) * scale  # (n,m)
            p = _softmax_lanes(s)
            oh = jnp.dot(p, vh, preferred_element_type=f32)              # (n,dv)
            attn_out = attn_out + jnp.dot(oh, wo_ref[l, h],
                                          preferred_element_type=f32)    # (n,d)
        # post-LN residual MHA + FFN
        h1 = _layer_norm(x + attn_out, ln1g_ref[l], ln1b_ref[l])
        f = jnp.dot(h1, w1_ref[l], preferred_element_type=f32) + b1_ref[l]
        f = jnp.maximum(f, 0.0)
        f = jnp.dot(f, w2_ref[l], preferred_element_type=f32) + b2_ref[l]
        x = _layer_norm(h1 + f, ln2g_ref[l], ln2b_ref[l])

    # ---- sectionalization mask head: sigmoid(linear1), threshold at 0.5 ------
    z = jnp.dot(x, wmask_ref[...], preferred_element_type=f32)           # (n,1)
    sig = 1.0 / (1.0 + jnp.exp(-z))
    mask = jnp.where(sig > 0.5, 1.0, 0.0)                                # (n,1)

    # fallback: if everything thresholded to 0, turn one candidate with a
    # nonzero pre-sigmoid output back on.
    # TODO(synk): torch picks a random nonzero index via randperm; here the
    #             first nonzero index is picked deterministically.
    row_ids = jax.lax.broadcasted_iota(jnp.int32, (N_NODE, 1), 0).astype(f32)
    cand = jnp.where(z != 0.0, row_ids, float(N_NODE))
    first_nz = jnp.min(cand)                                             # scalar
    fallback = (row_ids == first_nz).astype(f32)                         # (n,1)
    all_zero = (jnp.sum(mask) < 0.5).astype(f32)                         # scalar
    mask = mask + all_zero * fallback

    # ---- pointer head: mask*x, LN(x_path), 1-head attention, node softmax ----
    xm = x * mask                                                        # (n,d)
    xp = _layer_norm(x_path, lng_ref[...], lnb_ref[...])                 # (L,d)
    q = jnp.dot(xm, pwq_ref[...], preferred_element_type=f32)            # (n,dk)
    k = jnp.dot(xp, pwk_ref[...], preferred_element_type=f32)            # (L,dk)
    v = jnp.dot(xp, pwv_ref[...], preferred_element_type=f32)            # (L,dv)
    s = jax.lax.dot_general(q, k, (((1,), (1,)), ((), ())),
                            preferred_element_type=f32) * scale          # (n,L)
    p_attn = _softmax_lanes(s)
    ctx = jnp.dot(p_attn, v, preferred_element_type=f32)                 # (n,dv)
    logits = jnp.dot(ctx, pwo_ref[...], preferred_element_type=f32)      # (n,1)

    # softmax over the n candidates (kept in (n,1) layout -> no transposes)
    e = jnp.exp(logits - jnp.max(logits))
    ptr_probs = e / jnp.sum(e)                                           # (n,1)

    # mask, renormalise (== Categorical(probs=...)), log-probs, entropy
    xprob = ptr_probs * mask
    p_cat = xprob / jnp.sum(xprob)                                       # (n,1)
    safe = jnp.where(p_cat > 0.0, p_cat, 1.0)
    logp = jnp.where(p_cat > 0.0, jnp.log(safe), -jnp.inf)
    ent = -jnp.sum(jnp.where(p_cat > 0.0, p_cat * jnp.log(safe), 0.0))

    p_ref[...] = p_cat
    logp_ref[...] = logp
    ent_ref[...] = jnp.zeros_like(ent_ref) + ent


# ------------------------------ kernel wrapper --------------------------------
@jax.jit
def _actor_fused(obs, params):
    args = (obs,) + tuple(params[k] for k in _ARG_ORDER)
    return pl.pallas_call(
        actor_fused_kernel,
        out_shape=(jax.ShapeDtypeStruct((N_NODE, 1), jnp.float32),   # probs
                   jax.ShapeDtypeStruct((N_NODE, 1), jnp.float32),   # log-probs
                   jax.ShapeDtypeStruct((1, 1), jnp.float32)),       # entropy
        in_specs=[_VMEM] * (1 + len(_ARG_ORDER)),
        out_specs=(_VMEM, _VMEM, _VMEM),
    )(*args)


# --------------------------------- params -------------------------------------
def init_params(key):
    ks = iter(jax.random.split(key, 16))

    def nrm(shape, scale=0.1):
        return jax.random.normal(next(ks), shape, jnp.float32) * scale

    return dict(
        # decoder stack; weights stacked on (n_layer, n_head, ...) leading axes
        wq=nrm((N_LAYER, N_HEAD, D_NODE, D_K)),
        wk=nrm((N_LAYER, N_HEAD, D_NODE, D_K)),
        wv=nrm((N_LAYER, N_HEAD, D_NODE, D_V)),
        wo=nrm((N_LAYER, N_HEAD, D_V, D_NODE)),
        ln1_g=jnp.ones((N_LAYER, 1, D_NODE), jnp.float32),
        ln1_b=jnp.zeros((N_LAYER, 1, D_NODE), jnp.float32),
        w1=nrm((N_LAYER, D_NODE, D_HID)),
        b1=jnp.zeros((N_LAYER, 1, D_HID), jnp.float32),
        w2=nrm((N_LAYER, D_HID, D_NODE)),
        b2=jnp.zeros((N_LAYER, 1, D_NODE), jnp.float32),
        ln2_g=jnp.ones((N_LAYER, 1, D_NODE), jnp.float32),
        ln2_b=jnp.zeros((N_LAYER, 1, D_NODE), jnp.float32),
        # sectionalization mask head (linear1, no bias)
        w_mask=nrm((D_NODE, 1)),
        # Actor.layer_norm (applied to x_path)
        ln_g=jnp.ones((1, D_NODE), jnp.float32),
        ln_b=jnp.zeros((1, D_NODE), jnp.float32),
        # pointer network (1 head)
        ptr_wq=nrm((D_NODE, D_K)),
        ptr_wk=nrm((D_NODE, D_K)),
        ptr_wv=nrm((D_NODE, D_V)),
        ptr_wo=nrm((D_V, 1)),
    )


# ---------------------------------- Actor --------------------------------------
def actor_forward(obs, params, key, action=None):
    """obs: (n_node*n_agent + path_len, d_node) float32."""
    p, logp, ent = _actor_fused(obs, params)
    logits = logp[:, 0]                                   # (n,) categorical log-probs
    if action is None:
        action = jax.random.categorical(key, logits)      # sample (host-side RNG)
    log_prob = logits[action]
    entropy = ent[0, 0]
    return action, log_prob, entropy


# ----------------------------------- main ---------------------------------------
if __name__ == "__main__":
    key = jax.random.PRNGKey(0)
    k_obs, k_param, k_sample = jax.random.split(key, 3)

    obs = jax.random.normal(
        k_obs, (N_NODE * N_AGENT + PATH_LEN, D_NODE), jnp.float32)   # (32, 32)
    params = init_params(k_param)

    action, log_prob, entropy = actor_forward(obs, params, k_sample, action=None)
    jax.block_until_ready((action, log_prob, entropy))
    print("KERNEL_OK")
</pallas_src>

<mosaic_0001>
module attributes {stable_mosaic.version = 11 : i64} {
  func.func @actor_fused_kernel(%arg0: memref<32x32xf32, #tpu.memory_space<vmem>>, %arg1: memref<2x2x32x16xf32, #tpu.memory_space<vmem>>, %arg2: memref<2x2x32x16xf32, #tpu.memory_space<vmem>>, %arg3: memref<2x2x32x16xf32, #tpu.memory_space<vmem>>, %arg4: memref<2x2x16x32xf32, #tpu.memory_space<vmem>>, %arg5: memref<2x1x32xf32, #tpu.memory_space<vmem>>, %arg6: memref<2x1x32xf32, #tpu.memory_space<vmem>>, %arg7: memref<2x32x64xf32, #tpu.memory_space<vmem>>, %arg8: memref<2x1x64xf32, #tpu.memory_space<vmem>>, %arg9: memref<2x64x32xf32, #tpu.memory_space<vmem>>, %arg10: memref<2x1x32xf32, #tpu.memory_space<vmem>>, %arg11: memref<2x1x32xf32, #tpu.memory_space<vmem>>, %arg12: memref<2x1x32xf32, #tpu.memory_space<vmem>>, %arg13: memref<32x1xf32, #tpu.memory_space<vmem>>, %arg14: memref<1x32xf32, #tpu.memory_space<vmem>>, %arg15: memref<1x32xf32, #tpu.memory_space<vmem>>, %arg16: memref<32x16xf32, #tpu.memory_space<vmem>>, %arg17: memref<32x16xf32, #tpu.memory_space<vmem>>, %arg18: memref<32x16xf32, #tpu.memory_space<vmem>>, %arg19: memref<16x1xf32, #tpu.memory_space<vmem>>, %arg20: memref<8x1xf32, #tpu.memory_space<vmem>>, %arg21: memref<8x1xf32, #tpu.memory_space<vmem>>, %arg22: memref<1x1xf32, #tpu.memory_space<vmem>>) attributes {dimension_semantics = [], scalar_prefetch = 0 : i64, scratch_operands = 0 : i64, tpu.core_type = #tpu.core_type<tc>} {
    %c0 = arith.constant 0 : index
    %c0_0 = arith.constant 0 : index
    %0 = vector.load %arg0[%c0, %c0_0] : memref<32x32xf32, #tpu.memory_space<vmem>>, vector<8x32xf32>
    %c8 = arith.constant 8 : index
    %c0_1 = arith.constant 0 : index
    %1 = vector.load %arg0[%c8, %c0_1] : memref<32x32xf32, #tpu.memory_space<vmem>>, vector<16x32xf32>
    %c24 = arith.constant 24 : index
    %c0_2 = arith.constant 0 : index
    %2 = vector.load %arg0[%c24, %c0_2] : memref<32x32xf32, #tpu.memory_space<vmem>>, vector<8x32xf32>
    %cst = arith.constant 0.000000e+00 : f32
    %3 = vector.broadcast %cst : f32 to vector<8x32xf32>
    %c0_3 = arith.constant 0 : index
    %c0_4 = arith.constant 0 : index
    %c0_5 = arith.constant 0 : index
    %c0_6 = arith.constant 0 : index
    %4 = vector.load %arg1[%c0_3, %c0_4, %c0_5, %c0_6] : memref<2x2x32x16xf32, #tpu.memory_space<vmem>>, vector<1x1x32x16xf32>
    %5 = vector.shape_cast %4 : vector<1x1x32x16xf32> to vector<32x16xf32>
    %cst_7 = arith.constant dense<0.000000e+00> : vector<8x16xf32>
    %6 = tpu.matmul %0, %5, %cst_7 {dimension_numbers = #tpu.dot_dimension_numbers<[1], [0], [0], [1], [0, 0, 1, 1], [], []>} : vector<8x32xf32>, vector<32x16xf32>, vector<8x16xf32> -> vector<8x16xf32>
    %c0_8 = arith.constant 0 : index
    %c0_9 = arith.constant 0 : index
    %c0_10 = arith.constant 0 : index
    %c0_11 = arith.constant 0 : index
    %7 = vector.load %arg2[%c0_8, %c0_9, %c0_10, %c0_11] : memref<2x2x32x16xf32, #tpu.memory_space<vmem>>, vector<1x1x32x16xf32>
    %8 = vector.shape_cast %7 : vector<1x1x32x16xf32> to vector<32x16xf32>
    %cst_12 = arith.constant dense<0.000000e+00> : vector<16x16xf32>
    %9 = tpu.matmul %1, %8, %cst_12 {dimension_numbers = #tpu.dot_dimension_numbers<[1], [0], [0], [1], [0, 0, 1, 1], [], []>} : vector<16x32xf32>, vector<32x16xf32>, vector<16x16xf32> -> vector<16x16xf32>
    %c0_13 = arith.constant 0 : index
    %c0_14 = arith.constant 0 : index
    %c0_15 = arith.constant 0 : index
    %c0_16 = arith.constant 0 : index
    %10 = vector.load %arg3[%c0_13, %c0_14, %c0_15, %c0_16] : memref<2x2x32x16xf32, #tpu.memory_space<vmem>>, vector<1x1x32x16xf32>
    %11 = vector.shape_cast %10 : vector<1x1x32x16xf32> to vector<32x16xf32>
    %cst_17 = arith.constant dense<0.000000e+00> : vector<16x16xf32>
    %12 = tpu.matmul %1, %11, %cst_17 {dimension_numbers = #tpu.dot_dimension_numbers<[1], [0], [0], [1], [0, 0, 1, 1], [], []>} : vector<16x32xf32>, vector<32x16xf32>, vector<16x16xf32> -> vector<16x16xf32>
    %cst_18 = arith.constant dense<0.000000e+00> : vector<8x16xf32>
    %13 = tpu.matmul %6, %9, %cst_18 {dimension_numbers = #tpu.dot_dimension_numbers<[1], [1], [0], [0], [0, 0, 1, 0], [], []>} : vector<8x16xf32>, vector<16x16xf32>, vector<8x16xf32> -> vector<8x16xf32>
    %cst_19 = arith.constant 2.500000e-01 : f32
    %14 = vector.broadcast %cst_19 : f32 to vector<8x16xf32>
    %15 = arith.mulf %13, %14 : vector<8x16xf32>
    %cst_20 = arith.constant dense<0xFF800000> : vector<8xf32>
    %16 = vector.multi_reduction <maximumf>, %15, %cst_20 [1] : vector<8x16xf32> to vector<8xf32>
    %17 = vector.shape_cast %16 : vector<8xf32> to vector<8x1xf32>
    %18 = vector.broadcast %17 : vector<8x1xf32> to vector<8x16xf32>
    %19 = arith.subf %15, %18 : vector<8x16xf32>
    %20 = math.exp %19 : vector<8x16xf32>
    %cst_21 = arith.constant dense<0.000000e+00> : vector<8xf32>
    %21 = vector.multi_reduction <add>, %20, %cst_21 [1] : vector<8x16xf32> to vector<8xf32>
    %22 = vector.shape_cast %21 : vector<8xf32> to vector<8x1xf32>
    %23 = tpu.reciprocal %22 {approx = true} : vector<8x1xf32> -> vector<8x1xf32>
    %24 = vector.broadcast %23 : vector<8x1xf32> to vector<8x16xf32>
    %25 = arith.mulf %20, %24 : vector<8x16xf32>
    %cst_22 = arith.constant dense<0.000000e+00> : vector<8x16xf32>
    %26 = tpu.matmul %25, %12, %cst_22 {dimension_numbers = #tpu.dot_dimension_numbers<[1], [0], [0], [1], [0, 0, 1, 1], [], []>} : vector<8x16xf32>, vector<16x16xf32>, vector<8x16xf32> -> vector<8x16xf32>
    %c0_23 = arith.constant 0 : index
    %c0_24 = arith.constant 0 : index
    %c0_25 = arith.constant 0 : index
    %c0_26 = arith.constant 0 : index
    %27 = vector.load %arg4[%c0_23, %c0_24, %c0_25, %c0_26] : memref<2x2x16x32xf32, #tpu.memory_space<vmem>>, vector<1x1x16x32xf32>
    %28 = vector.shape_cast %27 : vector<1x1x16x32xf32> to vector<16x32xf32>
    %cst_27 = arith.constant dense<0.000000e+00> : vector<8x32xf32>
    %29 = tpu.matmul %26, %28, %cst_27 {dimension_numbers = #tpu.dot_dimension_numbers<[1], [0], [0], [1], [0, 0, 1, 1], [], []>} : vector<8x16xf32>, vector<16x32xf32>, vector<8x32xf32> -> vector<8x32xf32>
    %30 = arith.addf %3, %29 : vector<8x32xf32>
    %c0_28 = arith.constant 0 : index
    %c1 = arith.constant 1 : index
    %c0_29 = arith.constant 0 : index
    %c0_30 = arith.constant 0 : index
    %31 = vector.load %arg1[%c0_28, %c1, %c0_29, %c0_30] : memref<2x2x32x16xf32, #tpu.memory_space<vmem>>, vector<1x1x32x16xf32>
    %32 = vector.shape_cast %31 : vector<1x1x32x16xf32> to vector<32x16xf32>
    %cst_31 = arith.constant dense<0.000000e+00> : vector<8x16xf32>
    %33 = tpu.matmul %0, %32, %cst_31 {dimension_numbers = #tpu.dot_dimension_numbers<[1], [0], [0], [1], [0, 0, 1, 1], [], []>} : vector<8x32xf32>, vector<32x16xf32>, vector<8x16xf32> -> vector<8x16xf32>
    %c0_32 = arith.constant 0 : index
    %c1_33 = arith.constant 1 : index
    %c0_34 = arith.constant 0 : index
    %c0_35 = arith.constant 0 : index
    %34 = vector.load %arg2[%c0_32, %c1_33, %c0_34, %c0_35] : memref<2x2x32x16xf32, #tpu.memory_space<vmem>>, vector<1x1x32x16xf32>
    %35 = vector.shape_cast %34 : vector<1x1x32x16xf32> to vector<32x16xf32>
    %cst_36 = arith.constant dense<0.000000e+00> : vector<16x16xf32>
    %36 = tpu.matmul %1, %35, %cst_36 {dimension_numbers = #tpu.dot_dimension_numbers<[1], [0], [0], [1], [0, 0, 1, 1], [], []>} : vector<16x32xf32>, vector<32x16xf32>, vector<16x16xf32> -> vector<16x16xf32>
    %c0_37 = arith.constant 0 : index
    %c1_38 = arith.constant 1 : index
    %c0_39 = arith.constant 0 : index
    %c0_40 = arith.constant 0 : index
    %37 = vector.load %arg3[%c0_37, %c1_38, %c0_39, %c0_40] : memref<2x2x32x16xf32, #tpu.memory_space<vmem>>, vector<1x1x32x16xf32>
    %38 = vector.shape_cast %37 : vector<1x1x32x16xf32> to vector<32x16xf32>
    %cst_41 = arith.constant dense<0.000000e+00> : vector<16x16xf32>
    %39 = tpu.matmul %1, %38, %cst_41 {dimension_numbers = #tpu.dot_dimension_numbers<[1], [0], [0], [1], [0, 0, 1, 1], [], []>} : vector<16x32xf32>, vector<32x16xf32>, vector<16x16xf32> -> vector<16x16xf32>
    %cst_42 = arith.constant dense<0.000000e+00> : vector<8x16xf32>
    %40 = tpu.matmul %33, %36, %cst_42 {dimension_numbers = #tpu.dot_dimension_numbers<[1], [1], [0], [0], [0, 0, 1, 0], [], []>} : vector<8x16xf32>, vector<16x16xf32>, vector<8x16xf32> -> vector<8x16xf32>
    %cst_43 = arith.constant 2.500000e-01 : f32
    %41 = vector.broadcast %cst_43 : f32 to vector<8x16xf32>
    %42 = arith.mulf %40, %41 : vector<8x16xf32>
    %cst_44 = arith.constant dense<0xFF800000> : vector<8xf32>
    %43 = vector.multi_reduction <maximumf>, %42, %cst_44 [1] : vector<8x16xf32> to vector<8xf32>
    %44 = vector.shape_cast %43 : vector<8xf32> to vector<8x1xf32>
    %45 = vector.broadcast %44 : vector<8x1xf32> to vector<8x16xf32>
    %46 = arith.subf %42, %45 : vector<8x16xf32>
    %47 = math.exp %46 : vector<8x16xf32>
    %cst_45 = arith.constant dense<0.000000e+00> : vector<8xf32>
    %48 = vector.multi_reduction <add>, %47, %cst_45 [1] : vector<8x16xf32> to vector<8xf32>
    %49 = vector.shape_cast %48 : vector<8xf32> to vector<8x1xf32>
    %50 = tpu.reciprocal %49 {approx = true} : vector<8x1xf32> -> vector<8x1xf32>
    %51 = vector.broadcast %50 : vector<8x1xf32> to vector<8x16xf32>
    %52 = arith.mulf %47, %51 : vector<8x16xf32>
    %cst_46 = arith.constant dense<0.000000e+00> : vector<8x16xf32>
    %53 = tpu.matmul %52, %39, %cst_46 {dimension_numbers = #tpu.dot_dimension_numbers<[1], [0], [0], [1], [0, 0, 1, 1], [], []>} : vector<8x16xf32>, vector<16x16xf32>, vector<8x16xf32> -> vector<8x16xf32>
    %c0_47 = arith.constant 0 : index
    %c1_48 = arith.constant 1 : index
    %c0_49 = arith.constant 0 : index
    %c0_50 = arith.constant 0 : index
    %54 = vector.load %arg4[%c0_47, %c1_48, %c0_49, %c0_50] : memref<2x2x16x32xf32, #tpu.memory_space<vmem>>, vector<1x1x16x32xf32>
    %55 = vector.shape_cast %54 : vector<1x1x16x32xf32> to vector<16x32xf32>
    %cst_51 = arith.constant dense<0.000000e+00> : vector<8x32xf32>
    %56 = tpu.matmul %53, %55, %cst_51 {dimension_numbers = #tpu.dot_dimension_numbers<[1], [0], [0], [1], [0, 0, 1, 1], [], []>} : vector<8x16xf32>, vector<16x32xf32>, vector<8x32xf32> -> vector<8x32xf32>
    %57 = arith.addf %30, %56 : vector<8x32xf32>
    %58 = arith.addf %0, %57 : vector<8x32xf32>
    %c0_52 = arith.constant 0 : index
    %c0_53 = arith.constant 0 : index
    %c0_54 = arith.constant 0 : index
    %59 = vector.load %arg5[%c0_52, %c0_53, %c0_54] : memref<2x1x32xf32, #tpu.memory_space<vmem>>, vector<1x1x32xf32>
    %60 = vector.shape_cast %59 : vector<1x1x32xf32> to vector<1x32xf32>
    %c0_55 = arith.constant 0 : index
    %c0_56 = arith.constant 0 : index
    %c0_57 = arith.constant 0 : index
    %61 = vector.load %arg6[%c0_55, %c0_56, %c0_57] : memref<2x1x32xf32, #tpu.memory_space<vmem>>, vector<1x1x32xf32>
    %62 = vector.shape_cast %61 : vector<1x1x32xf32> to vector<1x32xf32>
    %cst_58 = arith.constant dense<0.000000e+00> : vector<8xf32>
    %63 = vector.multi_reduction <add>, %58, %cst_58 [1] : vector<8x32xf32> to vector<8xf32>
    %64 = vector.shape_cast %63 : vector<8xf32> to vector<8x1xf32>
    %cst_59 = arith.constant 3.200000e+01 : f32
    %65 = vector.broadcast %cst_59 : f32 to vector<8x1xf32>
    %66 = arith.divf %64, %65 : vector<8x1xf32>
    %67 = vector.broadcast %66 : vector<8x1xf32> to vector<8x32xf32>
    %68 = arith.subf %58, %67 : vector<8x32xf32>
    %69 = arith.mulf %68, %68 : vector<8x32xf32>
    %cst_60 = arith.constant dense<0.000000e+00> : vector<8xf32>
    %70 = vector.multi_reduction <add>, %69, %cst_60 [1] : vector<8x32xf32> to vector<8xf32>
    %71 = vector.shape_cast %70 : vector<8xf32> to vector<8x1xf32>
    %cst_61 = arith.constant 3.200000e+01 : f32
    %72 = vector.broadcast %cst_61 : f32 to vector<8x1xf32>
    %73 = arith.divf %71, %72 : vector<8x1xf32>
    %74 = vector.broadcast %66 : vector<8x1xf32> to vector<8x32xf32>
    %75 = arith.subf %58, %74 : vector<8x32xf32>
    %cst_62 = arith.constant 9.99999997E-7 : f32
    %76 = vector.broadcast %cst_62 : f32 to vector<8x1xf32>
    %77 = arith.addf %73, %76 : vector<8x1xf32>
    %78 = math.rsqrt %77 : vector<8x1xf32>
    %79 = vector.broadcast %78 : vector<8x1xf32> to vector<8x32xf32>
    %80 = arith.mulf %75, %79 : vector<8x32xf32>
    %81 = vector.broadcast %60 : vector<1x32xf32> to vector<8x32xf32>
    %82 = arith.mulf %80, %81 : vector<8x32xf32>
    %83 = vector.broadcast %62 : vector<1x32xf32> to vector<8x32xf32>
    %84 = arith.addf %82, %83 : vector<8x32xf32>
    %c0_63 = arith.constant 0 : index
    %c0_64 = arith.constant 0 : index
    %c0_65 = arith.constant 0 : index
    %85 = vector.load %arg7[%c0_63, %c0_64, %c0_65] : memref<2x32x64xf32, #tpu.memory_space<vmem>>, vector<1x32x64xf32>
    %86 = vector.shape_cast %85 : vector<1x32x64xf32> to vector<32x64xf32>
    %cst_66 = arith.constant dense<0.000000e+00> : vector<8x64xf32>
    %87 = tpu.matmul %84, %86, %cst_66 {dimension_numbers = #tpu.dot_dimension_numbers<[1], [0], [0], [1], [0, 0, 1, 1], [], []>} : vector<8x32xf32>, vector<32x64xf32>, vector<8x64xf32> -> vector<8x64xf32>
    %c0_67 = arith.constant 0 : index
    %c0_68 = arith.constant 0 : index
    %c0_69 = arith.constant 0 : index
    %88 = vector.load %arg8[%c0_67, %c0_68, %c0_69] : memref<2x1x64xf32, #tpu.memory_space<vmem>>, vector<1x1x64xf32>
    %89 = vector.shape_cast %88 : vector<1x1x64xf32> to vector<1x64xf32>
    %90 = vector.broadcast %89 : vector<1x64xf32> to vector<8x64xf32>
    %91 = arith.addf %87, %90 : vector<8x64xf32>
    %cst_70 = arith.constant 0.000000e+00 : f32
    %92 = vector.broadcast %cst_70 : f32 to vector<8x64xf32>
    %93 = arith.maximumf %91, %92 : vector<8x64xf32>
    %c0_71 = arith.constant 0 : index
    %c0_72 = arith.constant 0 : index
    %c0_73 = arith.constant 0 : index
    %94 = vector.load %arg9[%c0_71, %c0_72, %c0_73] : memref<2x64x32xf32, #tpu.memory_space<vmem>>, vector<1x64x32xf32>
    %95 = vector.shape_cast %94 : vector<1x64x32xf32> to vector<64x32xf32>
    %cst_74 = arith.constant dense<0.000000e+00> : vector<8x32xf32>
    %96 = tpu.matmul %93, %95, %cst_74 {dimension_numbers = #tpu.dot_dimension_numbers<[1], [0], [0], [1], [0, 0, 1, 1], [], []>} : vector<8x64xf32>, vector<64x32xf32>, vector<8x32xf32> -> vector<8x32xf32>
    %c0_75 = arith.constant 0 : index
    %c0_76 = arith.constant 0 : index
    %c0_77 = arith.constant 0 : index
    %97 = vector.load %arg10[%c0_75, %c0_76, %c0_77] : memref<2x1x32xf32, #tpu.memory_space<vmem>>, vector<1x1x32xf32>
    %98 = vector.shape_cast %97 : vector<1x1x32xf32> to vector<1x32xf32>
    %99 = vector.broadcast %98 : vector<1x32xf32> to vector<8x32xf32>
    %100 = arith.addf %96, %99 : vector<8x32xf32>
    %101 = arith.addf %84, %100 : vector<8x32xf32>
    %c0_78 = arith.constant 0 : index
    %c0_79 = arith.constant 0 : index
    %c0_80 = arith.constant 0 : index
    %102 = vector.load %arg11[%c0_78, %c0_79, %c0_80] : memref<2x1x32xf32, #tpu.memory_space<vmem>>, vector<1x1x32xf32>
    %103 = vector.shape_cast %102 : vector<1x1x32xf32> to vector<1x32xf32>
    %c0_81 = arith.constant 0 : index
    %c0_82 = arith.constant 0 : index
    %c0_83 = arith.constant 0 : index
    %104 = vector.load %arg12[%c0_81, %c0_82, %c0_83] : memref<2x1x32xf32, #tpu.memory_space<vmem>>, vector<1x1x32xf32>
    %105 = vector.shape_cast %104 : vector<1x1x32xf32> to vector<1x32xf32>
    %cst_84 = arith.constant dense<0.000000e+00> : vector<8xf32>
    %106 = vector.multi_reduction <add>, %101, %cst_84 [1] : vector<8x32xf32> to vector<8xf32>
    %107 = vector.shape_cast %106 : vector<8xf32> to vector<8x1xf32>
    %cst_85 = arith.constant 3.200000e+01 : f32
    %108 = vector.broadcast %cst_85 : f32 to vector<8x1xf32>
    %109 = arith.divf %107, %108 : vector<8x1xf32>
    %110 = vector.broadcast %109 : vector<8x1xf32> to vector<8x32xf32>
    %111 = arith.subf %101, %110 : vector<8x32xf32>
    %112 = arith.mulf %111, %111 : vector<8x32xf32>
    %cst_86 = arith.constant dense<0.000000e+00> : vector<8xf32>
    %113 = vector.multi_reduction <add>, %112, %cst_86 [1] : vector<8x32xf32> to vector<8xf32>
    %114 = vector.shape_cast %113 : vector<8xf32> to vector<8x1xf32>
    %cst_87 = arith.constant 3.200000e+01 : f32
    %115 = vector.broadcast %cst_87 : f32 to vector<8x1xf32>
    %116 = arith.divf %114, %115 : vector<8x1xf32>
    %117 = vector.broadcast %109 : vector<8x1xf32> to vector<8x32xf32>
    %118 = arith.subf %101, %117 : vector<8x32xf32>
    %cst_88 = arith.constant 9.99999997E-7 : f32
    %119 = vector.broadcast %cst_88 : f32 to vector<8x1xf32>
    %120 = arith.addf %116, %119 : vector<8x1xf32>
    %121 = math.rsqrt %120 : vector<8x1xf32>
    %122 = vector.broadcast %121 : vector<8x1xf32> to vector<8x32xf32>
    %123 = arith.mulf %118, %122 : vector<8x32xf32>
    %124 = vector.broadcast %103 : vector<1x32xf32> to vector<8x32xf32>
    %125 = arith.mulf %123, %124 : vector<8x32xf32>
    %126 = vector.broadcast %105 : vector<1x32xf32> to vector<8x32xf32>
    %127 = arith.addf %125, %126 : vector<8x32xf32>
    %cst_89 = arith.constant 0.000000e+00 : f32
    %128 = vector.broadcast %cst_89 : f32 to vector<8x32xf32>
    %c1_90 = arith.constant 1 : index
    %c0_91 = arith.constant 0 : index
    %c0_92 = arith.constant 0 : index
    %c0_93 = arith.constant 0 : index
    %129 = vector.load %arg1[%c1_90, %c0_91, %c0_92, %c0_93] : memref<2x2x32x16xf32, #tpu.memory_space<vmem>>, vector<1x1x32x16xf32>
    %130 = vector.shape_cast %129 : vector<1x1x32x16xf32> to vector<32x16xf32>
    %cst_94 = arith.constant dense<0.000000e+00> : vector<8x16xf32>
    %131 = tpu.matmul %127, %130, %cst_94 {dimension_numbers = #tpu.dot_dimension_numbers<[1], [0], [0], [1], [0, 0, 1, 1], [], []>} : vector<8x32xf32>, vector<32x16xf32>, vector<8x16xf32> -> vector<8x16xf32>
    %c1_95 = arith.constant 1 : index
    %c0_96 = arith.constant 0 : index
    %c0_97 = arith.constant 0 : index
    %c0_98 = arith.constant 0 : index
    %132 = vector.load %arg2[%c1_95, %c0_96, %c0_97, %c0_98] : memref<2x2x32x16xf32, #tpu.memory_space<vmem>>, vector<1x1x32x16xf32>
    %133 = vector.shape_cast %132 : vector<1x1x32x16xf32> to vector<32x16xf32>
    %cst_99 = arith.constant dense<0.000000e+00> : vector<16x16xf32>
    %134 = tpu.matmul %1, %133, %cst_99 {dimension_numbers = #tpu.dot_dimension_numbers<[1], [0], [0], [1], [0, 0, 1, 1], [], []>} : vector<16x32xf32>, vector<32x16xf32>, vector<16x16xf32> -> vector<16x16xf32>
    %c1_100 = arith.constant 1 : index
    %c0_101 = arith.constant 0 : index
    %c0_102 = arith.constant 0 : index
    %c0_103 = arith.constant 0 : index
    %135 = vector.load %arg3[%c1_100, %c0_101, %c0_102, %c0_103] : memref<2x2x32x16xf32, #tpu.memory_space<vmem>>, vector<1x1x32x16xf32>
    %136 = vector.shape_cast %135 : vector<1x1x32x16xf32> to vector<32x16xf32>
    %cst_104 = arith.constant dense<0.000000e+00> : vector<16x16xf32>
    %137 = tpu.matmul %1, %136, %cst_104 {dimension_numbers = #tpu.dot_dimension_numbers<[1], [0], [0], [1], [0, 0, 1, 1], [], []>} : vector<16x32xf32>, vector<32x16xf32>, vector<16x16xf32> -> vector<16x16xf32>
    %cst_105 = arith.constant dense<0.000000e+00> : vector<8x16xf32>
    %138 = tpu.matmul %131, %134, %cst_105 {dimension_numbers = #tpu.dot_dimension_numbers<[1], [1], [0], [0], [0, 0, 1, 0], [], []>} : vector<8x16xf32>, vector<16x16xf32>, vector<8x16xf32> -> vector<8x16xf32>
    %cst_106 = arith.constant 2.500000e-01 : f32
    %139 = vector.broadcast %cst_106 : f32 to vector<8x16xf32>
    %140 = arith.mulf %138, %139 : vector<8x16xf32>
    %cst_107 = arith.constant dense<0xFF800000> : vector<8xf32>
    %141 = vector.multi_reduction <maximumf>, %140, %cst_107 [1] : vector<8x16xf32> to vector<8xf32>
    %142 = vector.shape_cast %141 : vector<8xf32> to vector<8x1xf32>
    %143 = vector.broadcast %142 : vector<8x1xf32> to vector<8x16xf32>
    %144 = arith.subf %140, %143 : vector<8x16xf32>
    %145 = math.exp %144 : vector<8x16xf32>
    %cst_108 = arith.constant dense<0.000000e+00> : vector<8xf32>
    %146 = vector.multi_reduction <add>, %145, %cst_108 [1] : vector<8x16xf32> to vector<8xf32>
    %147 = vector.shape_cast %146 : vector<8xf32> to vector<8x1xf32>
    %148 = tpu.reciprocal %147 {approx = true} : vector<8x1xf32> -> vector<8x1xf32>
    %149 = vector.broadcast %148 : vector<8x1xf32> to vector<8x16xf32>
    %150 = arith.mulf %145, %149 : vector<8x16xf32>
    %cst_109 = arith.constant dense<0.000000e+00> : vector<8x16xf32>
    %151 = tpu.matmul %150, %137, %cst_109 {dimension_numbers = #tpu.dot_dimension_numbers<[1], [0], [0], [1], [0, 0, 1, 1], [], []>} : vector<8x16xf32>, vector<16x16xf32>, vector<8x16xf32> -> vector<8x16xf32>
    %c1_110 = arith.constant 1 : index
    %c0_111 = arith.constant 0 : index
    %c0_112 = arith.constant 0 : index
    %c0_113 = arith.constant 0 : index
    %152 = vector.load %arg4[%c1_110, %c0_111, %c0_112, %c0_113] : memref<2x2x16x32xf32, #tpu.memory_space<vmem>>, vector<1x1x16x32xf32>
    %153 = vector.shape_cast %152 : vector<1x1x16x32xf32> to vector<16x32xf32>
    %cst_114 = arith.constant dense<0.000000e+00> : vector<8x32xf32>
    %154 = tpu.matmul %151, %153, %cst_114 {dimension_numbers = #tpu.dot_dimension_numbers<[1], [0], [0], [1], [0, 0, 1, 1], [], []>} : vector<8x16xf32>, vector<16x32xf32>, vector<8x32xf32> -> vector<8x32xf32>
    %155 = arith.addf %128, %154 : vector<8x32xf32>
    %c1_115 = arith.constant 1 : index
    %c1_116 = arith.constant 1 : index
    %c0_117 = arith.constant 0 : index
    %c0_118 = arith.constant 0 : index
    %156 = vector.load %arg1[%c1_115, %c1_116, %c0_117, %c0_118] : memref<2x2x32x16xf32, #tpu.memory_space<vmem>>, vector<1x1x32x16xf32>
    %157 = vector.shape_cast %156 : vector<1x1x32x16xf32> to vector<32x16xf32>
    %cst_119 = arith.constant dense<0.000000e+00> : vector<8x16xf32>
    %158 = tpu.matmul %127, %157, %cst_119 {dimension_numbers = #tpu.dot_dimension_numbers<[1], [0], [0], [1], [0, 0, 1, 1], [], []>} : vector<8x32xf32>, vector<32x16xf32>, vector<8x16xf32> -> vector<8x16xf32>
    %c1_120 = arith.constant 1 : index
    %c1_121 = arith.constant 1 : index
    %c0_122 = arith.constant 0 : index
    %c0_123 = arith.constant 0 : index
    %159 = vector.load %arg2[%c1_120, %c1_121, %c0_122, %c0_123] : memref<2x2x32x16xf32, #tpu.memory_space<vmem>>, vector<1x1x32x16xf32>
    %160 = vector.shape_cast %159 : vector<1x1x32x16xf32> to vector<32x16xf32>
    %cst_124 = arith.constant dense<0.000000e+00> : vector<16x16xf32>
    %161 = tpu.matmul %1, %160, %cst_124 {dimension_numbers = #tpu.dot_dimension_numbers<[1], [0], [0], [1], [0, 0, 1, 1], [], []>} : vector<16x32xf32>, vector<32x16xf32>, vector<16x16xf32> -> vector<16x16xf32>
    %c1_125 = arith.constant 1 : index
    %c1_126 = arith.constant 1 : index
    %c0_127 = arith.constant 0 : index
    %c0_128 = arith.constant 0 : index
    %162 = vector.load %arg3[%c1_125, %c1_126, %c0_127, %c0_128] : memref<2x2x32x16xf32, #tpu.memory_space<vmem>>, vector<1x1x32x16xf32>
    %163 = vector.shape_cast %162 : vector<1x1x32x16xf32> to vector<32x16xf32>
    %cst_129 = arith.constant dense<0.000000e+00> : vector<16x16xf32>
    %164 = tpu.matmul %1, %163, %cst_129 {dimension_numbers = #tpu.dot_dimension_numbers<[1], [0], [0], [1], [0, 0, 1, 1], [], []>} : vector<16x32xf32>, vector<32x16xf32>, vector<16x16xf32> -> vector<16x16xf32>
    %cst_130 = arith.constant dense<0.000000e+00> : vector<8x16xf32>
    %165 = tpu.matmul %158, %161, %cst_130 {dimension_numbers = #tpu.dot_dimension_numbers<[1], [1], [0], [0], [0, 0, 1, 0], [], []>} : vector<8x16xf32>, vector<16x16xf32>, vector<8x16xf32> -> vector<8x16xf32>
    %cst_131 = arith.constant 2.500000e-01 : f32
    %166 = vector.broadcast %cst_131 : f32 to vector<8x16xf32>
    %167 = arith.mulf %165, %166 : vector<8x16xf32>
    %cst_132 = arith.constant dense<0xFF800000> : vector<8xf32>
    %168 = vector.multi_reduction <maximumf>, %167, %cst_132 [1] : vector<8x16xf32> to vector<8xf32>
    %169 = vector.shape_cast %168 : vector<8xf32> to vector<8x1xf32>
    %170 = vector.broadcast %169 : vector<8x1xf32> to vector<8x16xf32>
    %171 = arith.subf %167, %170 : vector<8x16xf32>
    %172 = math.exp %171 : vector<8x16xf32>
    %cst_133 = arith.constant dense<0.000000e+00> : vector<8xf32>
    %173 = vector.multi_reduction <add>, %172, %cst_133 [1] : vector<8x16xf32> to vector<8xf32>
    %174 = vector.shape_cast %173 : vector<8xf32> to vector<8x1xf32>
    %175 = tpu.reciprocal %174 {approx = true} : vector<8x1xf32> -> vector<8x1xf32>
    %176 = vector.broadcast %175 : vector<8x1xf32> to vector<8x16xf32>
    %177 = arith.mulf %172, %176 : vector<8x16xf32>
    %cst_134 = arith.constant dense<0.000000e+00> : vector<8x16xf32>
    %178 = tpu.matmul %177, %164, %cst_134 {dimension_numbers = #tpu.dot_dimension_numbers<[1], [0], [0], [1], [0, 0, 1, 1], [], []>} : vector<8x16xf32>, vector<16x16xf32>, vector<8x16xf32> -> vector<8x16xf32>
    %c1_135 = arith.constant 1 : index
    %c1_136 = arith.constant 1 : index
    %c0_137 = arith.constant 0 : index
    %c0_138 = arith.constant 0 : index
    %179 = vector.load %arg4[%c1_135, %c1_136, %c0_137, %c0_138] : memref<2x2x16x32xf32, #tpu.memory_space<vmem>>, vector<1x1x16x32xf32>
    %180 = vector.shape_cast %179 : vector<1x1x16x32xf32> to vector<16x32xf32>
    %cst_139 = arith.constant dense<0.000000e+00> : vector<8x32xf32>
    %181 = tpu.matmul %178, %180, %cst_139 {dimension_numbers = #tpu.dot_dimension_numbers<[1], [0], [0], [1], [0, 0, 1, 1], [], []>} : vector<8x16xf32>, vector<16x32xf32>, vector<8x32xf32> -> vector<8x32xf32>
    %182 = arith.addf %155, %181 : vector<8x32xf32>
    %183 = arith.addf %127, %182 : vector<8x32xf32>
    %c1_140 = arith.constant 1 : index
    %c0_141 = arith.constant 0 : index
    %c0_142 = arith.constant 0 : index
    %184 = vector.load %arg5[%c1_140, %c0_141, %c0_142] : memref<2x1x32xf32, #tpu.memory_space<vmem>>, vector<1x1x32xf32>
    %185 = vector.shape_cast %184 : vector<1x1x32xf32> to vector<1x32xf32>
    %c1_143 = arith.constant 1 : index
    %c0_144 = arith.constant 0 : index
    %c0_145 = arith.constant 0 : index
    %186 = vector.load %arg6[%c1_143, %c0_144, %c0_145] : memref<2x1x32xf32, #tpu.memory_space<vmem>>, vector<1x1x32xf32>
    %187 = vector.shape_cast %186 : vector<1x1x32xf32> to vector<1x32xf32>
    %cst_146 = arith.constant dense<0.000000e+00> : vector<8xf32>
    %188 = vector.multi_reduction <add>, %183, %cst_146 [1] : vector<8x32xf32> to vector<8xf32>
    %189 = vector.shape_cast %188 : vector<8xf32> to vector<8x1xf32>
    %cst_147 = arith.constant 3.200000e+01 : f32
    %190 = vector.broadcast %cst_147 : f32 to vector<8x1xf32>
    %191 = arith.divf %189, %190 : vector<8x1xf32>
    %192 = vector.broadcast %191 : vector<8x1xf32> to vector<8x32xf32>
    %193 = arith.subf %183, %192 : vector<8x32xf32>
    %194 = arith.mulf %193, %193 : vector<8x32xf32>
    %cst_148 = arith.constant dense<0.000000e+00> : vector<8xf32>
    %195 = vector.multi_reduction <add>, %194, %cst_148 [1] : vector<8x32xf32> to vector<8xf32>
    %196 = vector.shape_cast %195 : vector<8xf32> to vector<8x1xf32>
    %cst_149 = arith.constant 3.200000e+01 : f32
    %197 = vector.broadcast %cst_149 : f32 to vector<8x1xf32>
    %198 = arith.divf %196, %197 : vector<8x1xf32>
    %199 = vector.broadcast %191 : vector<8x1xf32> to vector<8x32xf32>
    %200 = arith.subf %183, %199 : vector<8x32xf32>
    %cst_150 = arith.constant 9.99999997E-7 : f32
    %201 = vector.broadcast %cst_150 : f32 to vector<8x1xf32>
    %202 = arith.addf %198, %201 : vector<8x1xf32>
    %203 = math.rsqrt %202 : vector<8x1xf32>
    %204 = vector.broadcast %203 : vector<8x1xf32> to vector<8x32xf32>
    %205 = arith.mulf %200, %204 : vector<8x32xf32>
    %206 = vector.broadcast %185 : vector<1x32xf32> to vector<8x32xf32>
    %207 = arith.mulf %205, %206 : vector<8x32xf32>
    %208 = vector.broadcast %187 : vector<1x32xf32> to vector<8x32xf32>
    %209 = arith.addf %207, %208 : vector<8x32xf32>
    %c1_151 = arith.constant 1 : index
    %c0_152 = arith.constant 0 : index
    %c0_153 = arith.constant 0 : index
    %210 = vector.load %arg7[%c1_151, %c0_152, %c0_153] : memref<2x32x64xf32, #tpu.memory_space<vmem>>, vector<1x32x64xf32>
    %211 = vector.shape_cast %210 : vector<1x32x64xf32> to vector<32x64xf32>
    %cst_154 = arith.constant dense<0.000000e+00> : vector<8x64xf32>
    %212 = tpu.matmul %209, %211, %cst_154 {dimension_numbers = #tpu.dot_dimension_numbers<[1], [0], [0], [1], [0, 0, 1, 1], [], []>} : vector<8x32xf32>, vector<32x64xf32>, vector<8x64xf32> -> vector<8x64xf32>
    %c1_155 = arith.constant 1 : index
    %c0_156 = arith.constant 0 : index
    %c0_157 = arith.constant 0 : index
    %213 = vector.load %arg8[%c1_155, %c0_156, %c0_157] : memref<2x1x64xf32, #tpu.memory_space<vmem>>, vector<1x1x64xf32>
    %214 = vector.shape_cast %213 : vector<1x1x64xf32> to vector<1x64xf32>
    %215 = vector.broadcast %214 : vector<1x64xf32> to vector<8x64xf32>
    %216 = arith.addf %212, %215 : vector<8x64xf32>
    %cst_158 = arith.constant 0.000000e+00 : f32
    %217 = vector.broadcast %cst_158 : f32 to vector<8x64xf32>
    %218 = arith.maximumf %216, %217 : vector<8x64xf32>
    %c1_159 = arith.constant 1 : index
    %c0_160 = arith.constant 0 : index
    %c0_161 = arith.constant 0 : index
    %219 = vector.load %arg9[%c1_159, %c0_160, %c0_161] : memref<2x64x32xf32, #tpu.memory_space<vmem>>, vector<1x64x32xf32>
    %220 = vector.shape_cast %219 : vector<1x64x32xf32> to vector<64x32xf32>
    %cst_162 = arith.constant dense<0.000000e+00> : vector<8x32xf32>
    %221 = tpu.matmul %218, %220, %cst_162 {dimension_numbers = #tpu.dot_dimension_numbers<[1], [0], [0], [1], [0, 0, 1, 1], [], []>} : vector<8x64xf32>, vector<64x32xf32>, vector<8x32xf32> -> vector<8x32xf32>
    %c1_163 = arith.constant 1 : index
    %c0_164 = arith.constant 0 : index
    %c0_165 = arith.constant 0 : index
    %222 = vector.load %arg10[%c1_163, %c0_164, %c0_165] : memref<2x1x32xf32, #tpu.memory_space<vmem>>, vector<1x1x32xf32>
    %223 = vector.shape_cast %222 : vector<1x1x32xf32> to vector<1x32xf32>
    %224 = vector.broadcast %223 : vector<1x32xf32> to vector<8x32xf32>
    %225 = arith.addf %221, %224 : vector<8x32xf32>
    %226 = arith.addf %209, %225 : vector<8x32xf32>
    %c1_166 = arith.constant 1 : index
    %c0_167 = arith.constant 0 : index
    %c0_168 = arith.constant 0 : index
    %227 = vector.load %arg11[%c1_166, %c0_167, %c0_168] : memref<2x1x32xf32, #tpu.memory_space<vmem>>, vector<1x1x32xf32>
    %228 = vector.shape_cast %227 : vector<1x1x32xf32> to vector<1x32xf32>
    %c1_169 = arith.constant 1 : index
    %c0_170 = arith.constant 0 : index
    %c0_171 = arith.constant 0 : index
    %229 = vector.load %arg12[%c1_169, %c0_170, %c0_171] : memref<2x1x32xf32, #tpu.memory_space<vmem>>, vector<1x1x32xf32>
    %230 = vector.shape_cast %229 : vector<1x1x32xf32> to vector<1x32xf32>
    %cst_172 = arith.constant dense<0.000000e+00> : vector<8xf32>
    %231 = vector.multi_reduction <add>, %226, %cst_172 [1] : vector<8x32xf32> to vector<8xf32>
    %232 = vector.shape_cast %231 : vector<8xf32> to vector<8x1xf32>
    %cst_173 = arith.constant 3.200000e+01 : f32
    %233 = vector.broadcast %cst_173 : f32 to vector<8x1xf32>
    %234 = arith.divf %232, %233 : vector<8x1xf32>
    %235 = vector.broadcast %234 : vector<8x1xf32> to vector<8x32xf32>
    %236 = arith.subf %226, %235 : vector<8x32xf32>
    %237 = arith.mulf %236, %236 : vector<8x32xf32>
    %cst_174 = arith.constant dense<0.000000e+00> : vector<8xf32>
    %238 = vector.multi_reduction <add>, %237, %cst_174 [1] : vector<8x32xf32> to vector<8xf32>
    %239 = vector.shape_cast %238 : vector<8xf32> to vector<8x1xf32>
    %cst_175 = arith.constant 3.200000e+01 : f32
    %240 = vector.broadcast %cst_175 : f32 to vector<8x1xf32>
    %241 = arith.divf %239, %240 : vector<8x1xf32>
    %242 = vector.broadcast %234 : vector<8x1xf32> to vector<8x32xf32>
    %243 = arith.subf %226, %242 : vector<8x32xf32>
    %cst_176 = arith.constant 9.99999997E-7 : f32
    %244 = vector.broadcast %cst_176 : f32 to vector<8x1xf32>
    %245 = arith.addf %241, %244 : vector<8x1xf32>
    %246 = math.rsqrt %245 : vector<8x1xf32>
    %247 = vector.broadcast %246 : vector<8x1xf32> to vector<8x32xf32>
    %248 = arith.mulf %243, %247 : vector<8x32xf32>
    %249 = vector.broadcast %228 : vector<1x32xf32> to vector<8x32xf32>
    %250 = arith.mulf %248, %249 : vector<8x32xf32>
    %251 = vector.broadcast %230 : vector<1x32xf32> to vector<8x32xf32>
    %252 = arith.addf %250, %251 : vector<8x32xf32>
    %c0_177 = arith.constant 0 : index
    %c0_178 = arith.constant 0 : index
    %253 = vector.load %arg13[%c0_177, %c0_178] : memref<32x1xf32, #tpu.memory_space<vmem>>, vector<32x1xf32>
    %cst_179 = arith.constant dense<0.000000e+00> : vector<8x1xf32>
    %254 = tpu.matmul %252, %253, %cst_179 {dimension_numbers = #tpu.dot_dimension_numbers<[1], [0], [0], [1], [0, 0, 1, 1], [], []>} : vector<8x32xf32>, vector<32x1xf32>, vector<8x1xf32> -> vector<8x1xf32>
    %cst_180 = arith.constant 0.000000e+00 : f32
    %255 = vector.broadcast %cst_180 : f32 to vector<8x1xf32>
    %256 = arith.subf %255, %254 : vector<8x1xf32>
    %257 = math.exp %256 : vector<8x1xf32>
    %cst_181 = arith.constant 1.000000e+00 : f32
    %258 = vector.broadcast %cst_181 : f32 to vector<8x1xf32>
    %259 = arith.addf %258, %257 : vector<8x1xf32>
    %cst_182 = arith.constant 1.000000e+00 : f32
    %260 = vector.broadcast %cst_182 : f32 to vector<8x1xf32>
    %261 = arith.divf %260, %259 : vector<8x1xf32>
    %cst_183 = arith.constant 5.000000e-01 : f32
    %262 = vector.broadcast %cst_183 : f32 to vector<8x1xf32>
    %263 = arith.cmpf ogt, %261, %262 : vector<8x1xf32>
    %cst_184 = arith.constant 1.000000e+00 : f32
    %cst_185 = arith.constant 0.000000e+00 : f32
    %264 = vector.broadcast %cst_184 : f32 to vector<8x1xf32>
    %265 = vector.broadcast %cst_185 : f32 to vector<8x1xf32>
    %266 = arith.select %263, %264, %265 : vector<8x1xi1>, vector<8x1xf32>
    %267 = tpu.iota {dimensions = array<i32: 0>} : vector<8x1xi32>
    %268 = arith.sitofp %267 : vector<8x1xi32> to vector<8x1xf32>
    %cst_186 = arith.constant 0.000000e+00 : f32
    %269 = vector.broadcast %cst_186 : f32 to vector<8x1xf32>
    %270 = arith.cmpf one, %254, %269 : vector<8x1xf32>
    %cst_187 = arith.constant 8.000000e+00 : f32
    %271 = vector.broadcast %cst_187 : f32 to vector<8x1xf32>
    %272 = arith.select %270, %268, %271 : vector<8x1xi1>, vector<8x1xf32>
    %273 = vector.shape_cast %272 : vector<8x1xf32> to vector<1x8x1xf32>
    %cst_188 = arith.constant dense<0x7F800000> : vector<1xf32>
    %274 = vector.multi_reduction <minimumf>, %273, %cst_188 [1, 2] : vector<1x8x1xf32> to vector<1xf32>
    %275 = vector.shape_cast %274 : vector<1xf32> to vector<1x1x1xf32>
    %276 = vector.extract %275[0, 0, 0] : f32 from vector<1x1x1xf32>
    %277 = vector.broadcast %276 : f32 to vector<8x1xf32>
    %278 = arith.cmpf oeq, %268, %277 : vector<8x1xf32>
    %279 = arith.extui %278 : vector<8x1xi1> to vector<8x1xi32>
    %280 = arith.sitofp %279 : vector<8x1xi32> to vector<8x1xf32>
    %281 = vector.shape_cast %266 : vector<8x1xf32> to vector<1x8x1xf32>
    %cst_189 = arith.constant dense<0.000000e+00> : vector<1xf32>
    %282 = vector.multi_reduction <add>, %281, %cst_189 [1, 2] : vector<1x8x1xf32> to vector<1xf32>
    %283 = vector.shape_cast %282 : vector<1xf32> to vector<1x1x1xf32>
    %284 = vector.extract %283[0, 0, 0] : f32 from vector<1x1x1xf32>
    %cst_190 = arith.constant 5.000000e-01 : f32
    %285 = arith.cmpf olt, %284, %cst_190 : f32
    %286 = arith.extui %285 : i1 to i32
    %287 = arith.sitofp %286 : i32 to f32
    %288 = vector.broadcast %287 : f32 to vector<8x1xf32>
    %289 = arith.mulf %288, %280 : vector<8x1xf32>
    %290 = arith.addf %266, %289 : vector<8x1xf32>
    %291 = vector.broadcast %290 : vector<8x1xf32> to vector<8x32xf32>
    %292 = arith.mulf %252, %291 : vector<8x32xf32>
    %c0_191 = arith.constant 0 : index
    %c0_192 = arith.constant 0 : index
    %293 = vector.load %arg14[%c0_191, %c0_192] : memref<1x32xf32, #tpu.memory_space<vmem>>, vector<1x32xf32>
    %c0_193 = arith.constant 0 : index
    %c0_194 = arith.constant 0 : index
    %294 = vector.load %arg15[%c0_193, %c0_194] : memref<1x32xf32, #tpu.memory_space<vmem>>, vector<1x32xf32>
    %cst_195 = arith.constant dense<0.000000e+00> : vector<8xf32>
    %295 = vector.multi_reduction <add>, %2, %cst_195 [1] : vector<8x32xf32> to vector<8xf32>
    %296 = vector.shape_cast %295 : vector<8xf32> to vector<8x1xf32>
    %cst_196 = arith.constant 3.200000e+01 : f32
    %297 = vector.broadcast %cst_196 : f32 to vector<8x1xf32>
    %298 = arith.divf %296, %297 : vector<8x1xf32>
    %299 = vector.broadcast %298 : vector<8x1xf32> to vector<8x32xf32>
    %300 = arith.subf %2, %299 : vector<8x32xf32>
    %301 = arith.mulf %300, %300 : vector<8x32xf32>
    %cst_197 = arith.constant dense<0.000000e+00> : vector<8xf32>
    %302 = vector.multi_reduction <add>, %301, %cst_197 [1] : vector<8x32xf32> to vector<8xf32>
    %303 = vector.shape_cast %302 : vector<8xf32> to vector<8x1xf32>
    %cst_198 = arith.constant 3.200000e+01 : f32
    %304 = vector.broadcast %cst_198 : f32 to vector<8x1xf32>
    %305 = arith.divf %303, %304 : vector<8x1xf32>
    %306 = vector.broadcast %298 : vector<8x1xf32> to vector<8x32xf32>
    %307 = arith.subf %2, %306 : vector<8x32xf32>
    %cst_199 = arith.constant 9.99999997E-7 : f32
    %308 = vector.broadcast %cst_199 : f32 to vector<8x1xf32>
    %309 = arith.addf %305, %308 : vector<8x1xf32>
    %310 = math.rsqrt %309 : vector<8x1xf32>
    %311 = vector.broadcast %310 : vector<8x1xf32> to vector<8x32xf32>
    %312 = arith.mulf %307, %311 : vector<8x32xf32>
    %313 = vector.broadcast %293 : vector<1x32xf32> to vector<8x32xf32>
    %314 = arith.mulf %312, %313 : vector<8x32xf32>
    %315 = vector.broadcast %294 : vector<1x32xf32> to vector<8x32xf32>
    %316 = arith.addf %314, %315 : vector<8x32xf32>
    %c0_200 = arith.constant 0 : index
    %c0_201 = arith.constant 0 : index
    %317 = vector.load %arg16[%c0_200, %c0_201] : memref<32x16xf32, #tpu.memory_space<vmem>>, vector<32x16xf32>
    %cst_202 = arith.constant dense<0.000000e+00> : vector<8x16xf32>
    %318 = tpu.matmul %292, %317, %cst_202 {dimension_numbers = #tpu.dot_dimension_numbers<[1], [0], [0], [1], [0, 0, 1, 1], [], []>} : vector<8x32xf32>, vector<32x16xf32>, vector<8x16xf32> -> vector<8x16xf32>
    %c0_203 = arith.constant 0 : index
    %c0_204 = arith.constant 0 : index
    %319 = vector.load %arg17[%c0_203, %c0_204] : memref<32x16xf32, #tpu.memory_space<vmem>>, vector<32x16xf32>
    %cst_205 = arith.constant dense<0.000000e+00> : vector<8x16xf32>
    %320 = tpu.matmul %316, %319, %cst_205 {dimension_numbers = #tpu.dot_dimension_numbers<[1], [0], [0], [1], [0, 0, 1, 1], [], []>} : vector<8x32xf32>, vector<32x16xf32>, vector<8x16xf32> -> vector<8x16xf32>
    %c0_206 = arith.constant 0 : index
    %c0_207 = arith.constant 0 : index
    %321 = vector.load %arg18[%c0_206, %c0_207] : memref<32x16xf32, #tpu.memory_space<vmem>>, vector<32x16xf32>
    %cst_208 = arith.constant dense<0.000000e+00> : vector<8x16xf32>
    %322 = tpu.matmul %316, %321, %cst_208 {dimension_numbers = #tpu.dot_dimension_numbers<[1], [0], [0], [1], [0, 0, 1, 1], [], []>} : vector<8x32xf32>, vector<32x16xf32>, vector<8x16xf32> -> vector<8x16xf32>
    %cst_209 = arith.constant dense<0.000000e+00> : vector<8x8xf32>
    %323 = tpu.matmul %318, %320, %cst_209 {dimension_numbers = #tpu.dot_dimension_numbers<[1], [1], [0], [0], [0, 0, 1, 0], [], []>} : vector<8x16xf32>, vector<8x16xf32>, vector<8x8xf32> -> vector<8x8xf32>
    %cst_210 = arith.constant 2.500000e-01 : f32
    %324 = vector.broadcast %cst_210 : f32 to vector<8x8xf32>
    %325 = arith.mulf %323, %324 : vector<8x8xf32>
    %cst_211 = arith.constant dense<0xFF800000> : vector<8xf32>
    %326 = vector.multi_reduction <maximumf>, %325, %cst_211 [1] : vector<8x8xf32> to vector<8xf32>
    %327 = vector.shape_cast %326 : vector<8xf32> to vector<8x1xf32>
    %328 = vector.broadcast %327 : vector<8x1xf32> to vector<8x8xf32>
    %329 = arith.subf %325, %328 : vector<8x8xf32>
    %330 = math.exp %329 : vector<8x8xf32>
    %cst_212 = arith.constant dense<0.000000e+00> : vector<8xf32>
    %331 = vector.multi_reduction <add>, %330, %cst_212 [1] : vector<8x8xf32> to vector<8xf32>
    %332 = vector.shape_cast %331 : vector<8xf32> to vector<8x1xf32>
    %333 = tpu.reciprocal %332 {approx = true} : vector<8x1xf32> -> vector<8x1xf32>
    %334 = vector.broadcast %333 : vector<8x1xf32> to vector<8x8xf32>
    %335 = arith.mulf %330, %334 : vector<8x8xf32>
    %cst_213 = arith.constant dense<0.000000e+00> : vector<8x16xf32>
    %336 = tpu.matmul %335, %322, %cst_213 {dimension_numbers = #tpu.dot_dimension_numbers<[1], [0], [0], [1], [0, 0, 1, 1], [], []>} : vector<8x8xf32>, vector<8x16xf32>, vector<8x16xf32> -> vector<8x16xf32>
    %c0_214 = arith.constant 0 : index
    %c0_215 = arith.constant 0 : index
    %337 = vector.load %arg19[%c0_214, %c0_215] : memref<16x1xf32, #tpu.memory_space<vmem>>, vector<16x1xf32>
    %cst_216 = arith.constant dense<0.000000e+00> : vector<8x1xf32>
    %338 = tpu.matmul %336, %337, %cst_216 {dimension_numbers = #tpu.dot_dimension_numbers<[1], [0], [0], [1], [0, 0, 1, 1], [], []>} : vector<8x16xf32>, vector<16x1xf32>, vector<8x1xf32> -> vector<8x1xf32>
    %339 = vector.shape_cast %338 : vector<8x1xf32> to vector<1x8x1xf32>
    %cst_217 = arith.constant dense<0xFF800000> : vector<1xf32>
    %340 = vector.multi_reduction <maximumf>, %339, %cst_217 [1, 2] : vector<1x8x1xf32> to vector<1xf32>
    %341 = vector.shape_cast %340 : vector<1xf32> to vector<1x1x1xf32>
    %342 = vector.extract %341[0, 0, 0] : f32 from vector<1x1x1xf32>
    %343 = vector.broadcast %342 : f32 to vector<8x1xf32>
    %344 = arith.subf %338, %343 : vector<8x1xf32>
    %345 = math.exp %344 : vector<8x1xf32>
    %346 = vector.shape_cast %345 : vector<8x1xf32> to vector<1x8x1xf32>
    %cst_218 = arith.constant dense<0.000000e+00> : vector<1xf32>
    %347 = vector.multi_reduction <add>, %346, %cst_218 [1, 2] : vector<1x8x1xf32> to vector<1xf32>
    %348 = vector.shape_cast %347 : vector<1xf32> to vector<1x1x1xf32>
    %349 = vector.extract %348[0, 0, 0] : f32 from vector<1x1x1xf32>
    %350 = vector.broadcast %349 : f32 to vector<8x1xf32>
    %351 = arith.divf %345, %350 : vector<8x1xf32>
    %352 = arith.mulf %351, %290 : vector<8x1xf32>
    %353 = vector.shape_cast %352 : vector<8x1xf32> to vector<1x8x1xf32>
    %cst_219 = arith.constant dense<0.000000e+00> : vector<1xf32>
    %354 = vector.multi_reduction <add>, %353, %cst_219 [1, 2] : vector<1x8x1xf32> to vector<1xf32>
    %355 = vector.shape_cast %354 : vector<1xf32> to vector<1x1x1xf32>
    %356 = vector.extract %355[0, 0, 0] : f32 from vector<1x1x1xf32>
    %357 = vector.broadcast %356 : f32 to vector<8x1xf32>
    %358 = arith.divf %352, %357 : vector<8x1xf32>
    %cst_220 = arith.constant 0.000000e+00 : f32
    %359 = vector.broadcast %cst_220 : f32 to vector<8x1xf32>
    %360 = arith.cmpf ogt, %358, %359 : vector<8x1xf32>
    %cst_221 = arith.constant 1.000000e+00 : f32
    %361 = vector.broadcast %cst_221 : f32 to vector<8x1xf32>
    %362 = arith.select %360, %358, %361 : vector<8x1xi1>, vector<8x1xf32>
    %cst_222 = arith.constant 0.000000e+00 : f32
    %363 = vector.broadcast %cst_222 : f32 to vector<8x1xf32>
    %364 = arith.cmpf ogt, %358, %363 : vector<8x1xf32>
    %365 = math.log %362 : vector<8x1xf32>
    %cst_223 = arith.constant 0xFF800000 : f32
    %366 = vector.broadcast %cst_223 : f32 to vector<8x1xf32>
    %367 = arith.select %364, %365, %366 : vector<8x1xi1>, vector<8x1xf32>
    %cst_224 = arith.constant 0.000000e+00 : f32
    %368 = vector.broadcast %cst_224 : f32 to vector<8x1xf32>
    %369 = arith.cmpf ogt, %358, %368 : vector<8x1xf32>
    %370 = math.log %362 : vector<8x1xf32>
    %371 = arith.mulf %358, %370 : vector<8x1xf32>
    %cst_225 = arith.constant 0.000000e+00 : f32
    %372 = vector.broadcast %cst_225 : f32 to vector<8x1xf32>
    %373 = arith.select %369, %371, %372 : vector<8x1xi1>, vector<8x1xf32>
    %374 = vector.shape_cast %373 : vector<8x1xf32> to vector<1x8x1xf32>
    %cst_226 = arith.constant dense<0.000000e+00> : vector<1xf32>
    %375 = vector.multi_reduction <add>, %374, %cst_226 [1, 2] : vector<1x8x1xf32> to vector<1xf32>
    %376 = vector.shape_cast %375 : vector<1xf32> to vector<1x1x1xf32>
    %377 = vector.extract %376[0, 0, 0] : f32 from vector<1x1x1xf32>
    %cst_227 = arith.constant 0.000000e+00 : f32
    %378 = arith.subf %cst_227, %377 : f32
    %c0_228 = arith.constant 0 : index
    %c0_229 = arith.constant 0 : index
    %379 = vector.load %arg20[%c0_228, %c0_229] : memref<8x1xf32, #tpu.memory_space<vmem>>, vector<8x1xf32>
    tpu.vector_store %arg20[%c0_228, %c0_229], %358 {strides = array<i32>} : memref<8x1xf32, #tpu.memory_space<vmem>>, vector<8x1xf32>,
    %c0_230 = arith.constant 0 : index
    %c0_231 = arith.constant 0 : index
    %380 = vector.load %arg21[%c0_230, %c0_231] : memref<8x1xf32, #tpu.memory_space<vmem>>, vector<8x1xf32>
    tpu.vector_store %arg21[%c0_230, %c0_231], %367 {strides = array<i32>} : memref<8x1xf32, #tpu.memory_space<vmem>>, vector<8x1xf32>,
    %cst_232 = arith.constant 0.000000e+00 : f32
    %381 = vector.broadcast %cst_232 : f32 to vector<1x1xf32>
    %382 = vector.broadcast %378 : f32 to vector<1x1xf32>
    %383 = arith.addf %381, %382 : vector<1x1xf32>
    %c0_233 = arith.constant 0 : index
    %c0_234 = arith.constant 0 : index
    %384 = vector.load %arg22[%c0_233, %c0_234] : memref<1x1xf32, #tpu.memory_space<vmem>>, vector<1x1xf32>
    tpu.vector_store %arg22[%c0_233, %c0_234], %383 {strides = array<i32>} : memref<1x1xf32, #tpu.memory_space<vmem>>, vector<1x1xf32>,
    return
  }
}

</mosaic_0001>

<bundles_post_ra>
// kernel: _actor_fused.1
= control target key start
LH: loop header
LB: loop body
LE: loop exit
PB: predicated region body
PF: predicated region fallthrough
CT: control target
= control target key end

     0   :  { %s4781_s0 = inlined_call_operand.vmem [shape: f32[32,32], index: 0, kind: input, shape index: {}]   ;;  %s4782_s1 = inlined_call_operand.vmem [shape: f32[2,2,32,16], index: 1, kind: input, shape index: {}]   ;;  %s4783_s2 = inlined_call_operand.vmem [shape: f32[2,2,32,16], index: 2, kind: input, shape index: {}]   ;;  %s4784_s3 = inlined_call_operand.vmem [shape: f32[2,2,32,16], index: 3, kind: input, shape index: {}]   ;;  %s4785_s4 = inlined_call_operand.vmem [shape: f32[2,2,16,32], index: 4, kind: input, shape index: {}]   ;;  %s4786_s5 = inlined_call_operand.vmem [shape: f32[2,1,32], index: 5, kind: input, shape index: {}]   ;;  %s4787_s6 = inlined_call_operand.vmem [shape: f32[2,1,32], index: 6, kind: input, shape index: {}]   ;;  %s4788_s7 = inlined_call_operand.vmem [shape: f32[2,32,64], index: 7, kind: input, shape index: {}]   ;;  %s4789_s8 = inlined_call_operand.vmem [shape: f32[2,1,64], index: 8, kind: input, shape index: {}]   ;;  %s4790_s9 = inlined_call_operand.vmem [shape: f32[2,64,32], index: 9, kind: input, shape index: {}]   ;;  %s4791_s10 = inlined_call_operand.vmem [shape: f32[2,1,32], index: 10, kind: input, shape index: {}]   ;;  %s4792_s11 = inlined_call_operand.vmem [shape: f32[2,1,32], index: 11, kind: input, shape index: {}]   ;;  %s4793_s12 = inlined_call_operand.vmem [shape: f32[2,1,32], index: 12, kind: input, shape index: {}]   ;;  %s4794_s13 = inlined_call_operand.vmem [shape: f32[32,1], index: 13, kind: input, shape index: {}]   ;;  %s4795_s14 = inlined_call_operand.vmem [shape: f32[1,32], index: 14, kind: input, shape index: {}]   ;;  %s4796_s15 = inlined_call_operand.vmem [shape: f32[1,32], index: 15, kind: input, shape index: {}]   ;;  %s4797_s16 = inlined_call_operand.vmem [shape: f32[32,16], index: 16, kind: input, shape index: {}]   ;;  %s4798_s17 = inlined_call_operand.vmem [shape: f32[32,16], index: 17, kind: input, shape index: {}]   ;;  %s4799_s18 = inlined_call_operand.vmem [shape: f32[32,16], index: 18, kind: input, shape index: {}]   ;;  %s4800_s19 = inlined_call_operand.vmem [shape: f32[16,1], index: 19, kind: input, shape index: {}]   ;;  %s4801_s20 = inlined_call_operand.vmem [shape: f32[8,1], index: 20, kind: output, shape index: {0}]   ;;  %s4802_s21 = inlined_call_operand.vmem [shape: f32[8,1], index: 21, kind: output, shape index: {1}]   ;;  %s4803_s22 = inlined_call_operand.hbm [shape: f32[1,1], index: 22, kind: output, shape index: {2}]  }
   0x1   :  { %4812 = sst [smem:[#allocation5_spill]] %s4781_s0 }
   0x2   :  { %4813 = sst [smem:[#allocation6_spill]] %s4782_s1 }
   0x3   :  { %4814 = sst [smem:[#allocation7_spill]] %s4783_s2 }
   0x4   :  { %4815 = sst [smem:[#allocation8_spill]] %s4784_s3 }
   0x5   :  { %4816 = sst [smem:[#allocation9_spill]] %s4785_s4 }
   0x6   :  { %4817 = sst [smem:[#allocation10_spill]] %s4786_s5 }
   0x7   :  { %4818 = sst [smem:[#allocation11_spill]] %s4787_s6 }
   0x8   :  { %4819 = sst [smem:[#allocation12_spill]] %s4803_s22 }
   0x9   :  { %s4820_s29 = sld [smem:[#allocation7_spill]]  ;;  %vm77_vm0 = vcmask 261120   ;;  %s4821_s25 = sld [smem:[#allocation5_spill]]  ;;  %v4065_v6 = vmov 0.0|0.0   ;;  %vm4066_vm1 = vmmov 0   ;;  %v4067_v11 = vmov 0.0  }
   0xa   :  { %3790 = vmatprep.subr.bf16.mxu0 %v4065_v6  ;;  %s4822_s27 = sld [smem:[#allocation6_spill]]  ;;  %3461 = vmatprep.mubr.msk.f32.mxu0 %vm4066_vm1, %v4067_v11 }
   0xf   :  { %v151_v0 = vld [vmem:[%s4820_s29] sm:$0xff]  ;;  %v152_v1 = vld [vmem:[%s4820_s29 + $0x8] sm:$0xff]  ;;  %v153_v2 = vld [vmem:[%s4820_s29 + $0x10] sm:$0xff] }
  0x10   :  { %v3796_v3 = vpack.c.bf16 %v152_v1, %v151_v0  ;;  %v154_v4 = vld [vmem:[%s4820_s29 + $0x18] sm:$0xff]  ;;  %v4200_v5 = vld [vmem:[%s4821_s25 + $0x8] sm:$0xff]  ;;  %v73_v8 = vld [vmem:[%s4822_s27] sm:$0xff] }
  0x11   :  { %v3800_v7 = vpack.c.bf16 %v154_v4, %v153_v2  ;;  %3472 = vmatprep.mubr.msk.f32.mxu1 %vm77_vm0, %v4200_v5  ;;  %v74_v9 = vld [vmem:[%s4822_s27 + $0x8] sm:$0xff]  ;;  %v75_v10 = vld [vmem:[%s4822_s27 + $0x10] sm:$0xff]  ;;  %v76_v13 = vld [vmem:[%s4822_s27 + $0x18] sm:$0xff] }
  0x12   :  { %3797 = vmatprep.subr.bf16.mxu1 %v3796_v3  ;;  %v3791_v12 = vpack.c.bf16 %v74_v9, %v73_v8 }
  0x13   :  { %28 = vsyncpa [#allocation3], 0  ;;  %3799 = vmatpush3.bf16.msra.mxu1 %v3796_v3  ;;  %v3794_v14 = vpack.c.bf16 %v76_v13, %v75_v10  ;;  %v4223_v15 = vld [vmem:[%s4821_s25 + $0x10] sm:$0xff]  ;;  %v4228_v16 = vld [vmem:[%s4821_s25] sm:$0xff]  ;;  %vm315_vm2 = vcmask 130048   ;;  %s4825_s3 = sld [smem:[#allocation8_spill]] }
  0x14   :  { %3801 = vmatprep.subr.bf16.mxu1 %v3800_v7  ;;  %3792 = vmatpush3.bf16.msra.mxu0 %v3791_v12  ;;  %vm4241_vm3 = vmpackc.low %vm315_vm2, %vm315_vm2  ;;  %v3181_v41 = vld [vmem:[%s4820_s29 + $0x20] sm:$0xff]  ;;  %v3182_v42 = vld [vmem:[%s4820_s29 + $0x28] sm:$0xff]  ;;  %s4826_s2 = sld [smem:[#allocation9_spill]]  ;;  %s4827_s6 = sld [smem:[#allocation10_spill]]  ;;  %vm1161_vm4 = vcmask 523264   ;;  %vm2549_vm5 = vcmask 7168  }
  0x15   :  { %3793 = vmatprep.subr.bf16.mxu0 %v4065_v6  ;;  %v3825_v43 = vpack.c.bf16 %v3182_v42, %v3181_v41  ;;  %v3176_v44 = vld [vmem:[%s4822_s27 + $0x20] sm:$0xff]  ;;  %v3177_v45 = vld [vmem:[%s4822_s27 + $0x28] sm:$0xff]  ;;  %v3178_v47 = vld [vmem:[%s4822_s27 + $0x30] sm:$0xff]  ;;  %s4828_s30 = sld [smem:[#allocation11_spill]]  ;;  %vm2920_vm9 = vcmask 64512   ;;  %vm3143_vm11 = vcmask 0  }
  0x16   :  { %v3820_v46 = vpack.c.bf16 %v3177_v45, %v3176_v44  ;;  %v3179_v48 = vld [vmem:[%s4822_s27 + $0x38] sm:$0xff]  ;;  %v3183_v51 = vld [vmem:[%s4820_s29 + $0x30] sm:$0xff] }
  0x17   :  { %3803 = vmatpush3.bf16.msra.mxu1 %v3800_v7  ;;  %v3823_v49 = vpack.c.bf16 %v3179_v48, %v3178_v47  ;;  %v3184_v52 = vld [vmem:[%s4820_s29 + $0x38] sm:$0xff]  ;;  %v1062_v47 = vld [vmem:[%s4788_s7 + $0x8] sm:$0xff] }
  0x18   :  { %3795 = vmatpush3.bf16.msra.mxu0 %v3794_v14  ;;  %3812 = vmatprep.subr.bf16.mxu1 %v4065_v6  ;;  %v3829_v55 = vpack.c.bf16 %v3184_v52, %v3183_v51  ;;  %v1146_v51 = vld [vmem:[%s4790_s9] sm:$0xff]  ;;  %v1147_v52 = vld [vmem:[%s4790_s9 + $0x8] sm:$0xff] }
  0x19   :  { %v236_v23 = vld [vmem:[%s4825_s3] sm:$0xff]  ;;  %v237_v24 = vld [vmem:[%s4825_s3 + $0x8] sm:$0xff]  ;;  %v238_v25 = vld [vmem:[%s4825_s3 + $0x10] sm:$0xff] }
  0x1a   :  { %3473 = vmatmul.mubr.msk.f32.vlgmr.msra.gmra.mrb[0].mxu1 %vm77_vm0, %v4223_v15  ;;  %v3804_v26 = vpack.c.bf16 %v237_v24, %v236_v23  ;;  %v239_v27 = vld [vmem:[%s4825_s3 + $0x18] sm:$0xff]  ;;  %v3187_v63 = vld [vmem:[%s4825_s3 + $0x20] sm:$0xff]  ;;  %v3188_v0 = vld [vmem:[%s4825_s3 + $0x28] sm:$0xff] }
  0x1b   :  { %3462 = vmatmul.mubr.msk.f32.vlgmr.msra.gmra.mrb[0].mxu0 %vm77_vm0, %v4228_v16  ;;  %3490 = vmatprep.mubr.msk.f32.mxu1 %vm4066_vm1, %v4067_v11  ;;  %v3808_v28 = vpack.c.bf16 %v239_v27, %v238_v25  ;;  %v3189_v1 = vld [vmem:[%s4825_s3 + $0x30] sm:$0xff]  ;;  %v3833_v2 = vpack.c.bf16 %v3188_v0, %v3187_v63  ;;  %v3190_v3 = vld [vmem:[%s4825_s3 + $0x38] sm:$0xff]  ;;  %v480_v27 = vld [vmem:[%s4826_s2] sm:$0xff] }
  0x1c   :  { %3483 = vmatprep.mubr.msk.f32.mxu0 %vm77_vm0, %v4200_v5  ;;  %3805 = vmatprep.subr.bf16.mxu0 %v3804_v26  ;;  %v3837_v4 = vpack.c.bf16 %v3190_v3, %v3189_v1  ;;  %v3197_v23 = vld [vmem:[%s4826_s2 + $0x10] sm:$0xff]  ;;  %v3198_v24 = vld [vmem:[%s4826_s2 + $0x18] sm:$0xff]  ;;  %v3201_v0 = vld [vmem:[%s4827_s6] ss:$0 sm:$0xff] }
  0x1d   :  { %3807 = vmatpush3.bf16.msra.mxu0 %v3804_v26  ;;  %v3849_v25 = vpack.c.bf16 %v3198_v24, %v3197_v23  ;;  %v3244_v19 = vld [vmem:[%s4825_s3 + $0x68] sm:$0xff] }
  0x1e   :  { %3809 = vmatprep.subr.bf16.mxu0 %v3808_v28 }
  0x21   :  { %3811 = vmatpush3.bf16.msra.mxu0 %v3808_v28  ;;  %v481_v28 = vld [vmem:[%s4826_s2 + $0x8] sm:$0xff] }
  0x22   :  { %3816 = vmatprep.subr.bf16.mxu0 %v4065_v6 }
  0x24   :  { %3484 = vmatmul.mubr.msk.f32.vlgmr.msra.gmra.mrb[2].mxu0 %vm77_vm0, %v4223_v15 }
  0x25   :  { %3497 = vmatprep.mubr.msk.f32.mxu0 %vm4066_vm1, %v4067_v11 }
  0xed   :  { %v3474_v17 = vpop.f32.mrb[0].mxu1 }
  0xee   :  { %v227_v18 = vpop.f32.mrb[1].mxu1  ;;  %v147_v20 = vpop.f32.mrb[0].mxu0 }
  0xef   :  { %v3813_v21 = vpack.c.bf16 %v3474_v17, %v227_v18  ;;  %v3463_v22 = vpop.f32.mrb[1].mxu0 }
  0xf1   :  { %3815 = vmatpush3.bf16.xpose.msk.msra.mxu1 %vm4241_vm3, %v3813_v21 }
  0xf2   :  { %3819 = vmatprep.subr.bf16.mxu1 %v4065_v6 }
  0xf7   :  { %v3485_v38 = vpop.f32.mrb[2].mxu0 }
  0xf8   :  { %3491 = vmatmul.mubr.msk.f32.vlgmr.msra.gmra.mrb[2].mxu1 %vm315_vm2, %v147_v20  ;;  %v306_v39 = vpop.f32.mrb[3].mxu0 }
  0xf9   :  { %3508 = vmatprep.mubr.msk.f32.mxu1 %vm4066_vm1, %v4067_v11  ;;  %v3817_v40 = vpack.c.bf16 %v3485_v38, %v306_v39  ;;  %3821 = vmatpush3.bf16.msra.mxu1 %v3820_v46  ;;  %v1061_v46 = vld [vmem:[%s4788_s7] sm:$0xff] }
  0xfa   :  { %3822 = vmatprep.subr.bf16.mxu1 %v4065_v6  ;;  %v3855_v48 = vpack.c.bf16 %v1062_v47, %v1061_v46  ;;  %v3216_v46 = vld [vmem:[%s4820_s29 + $0x50] sm:$0xff]  ;;  %v3217_v47 = vld [vmem:[%s4820_s29 + $0x58] sm:$0xff] }
  0xfb   :  { %3818 = vmatpush3.bf16.msra.mxu0 %v3817_v40 }
  0xfc   :  { %3826 = vmatprep.subr.bf16.mxu0 %v3825_v43 }
  0xfd   :  { %3824 = vmatpush3.bf16.msra.mxu1 %v3823_v49  ;;  %v1064_v49 = vld [vmem:[%s4788_s7 + $0x18] sm:$0xff] }
  0xfe   :  { %3834 = vmatprep.subr.bf16.mxu1 %v3833_v2 }
 0x100   :  { %3509 = vmatmul.mubr.msk.f32.vlgmr.msra.gmra.mrb[4].mxu1 %vm77_vm0, %v4228_v16 }
 0x101   :  { %3530 = vmatprep.mubr.msk.f32.mxu1 %vm77_vm0, %v4200_v5  ;;  %3836 = vmatpush3.bf16.msra.mxu1 %v3833_v2  ;;  %v3202_v2 = vld [vmem:[%s4828_s30] ss:$0 sm:$0xff] }
 0x102   :  { %3838 = vmatprep.subr.bf16.mxu1 %v3837_v4 }
 0x105   :  { %3840 = vmatpush3.bf16.msra.mxu1 %v3837_v4 }
 0x106   :  { %3845 = vmatprep.subr.bf16.mxu1 %v4065_v6 }
 0x108   :  { %3531 = vmatmul.mubr.msk.f32.vlgmr.msra.gmra.mrb[6].mxu1 %vm77_vm0, %v4223_v15 }
 0x109   :  { %3544 = vmatprep.mubr.msk.f32.mxu1 %vm4066_vm1, %v4067_v11 }
 0x1cb   :  { %v391_v29 = vpop.f32.mrb[2].mxu1 }
 0x1cc   :  { %v395_v30 = vmul.f32 0.25, %v391_v29  ;;  %v3492_v31 = vpop.f32.mrb[3].mxu1 }
 0x1ce   :  { %v396_v32 = vsel %vm315_vm2, %v395_v30, -inf }
 0x1cf   :  { %397 = vmax.xlane.f32.xlu0 %v396_v32 }
 0x1d3   :  { %v553_v56 = vpop.f32.mrb[4].mxu1 }
 0x1d4   :  { %v3510_v57 = vpop.f32.mrb[5].mxu1 }
 0x1d5   :  { %v1150_v57 = vld [vmem:[%s4790_s9 + $0x20] sm:$0xff] }
 0x1db   :  { %v3532_v20 = vpop.f32.mrb[6].mxu1 }
 0x1dc   :  { %v708_v21 = vpop.f32.mrb[7].mxu1 }
 0x1dd   :  { %v3846_v22 = vpack.c.bf16 %v3532_v20, %v708_v21 }
 0x1df   :  { %3847 = vmatpush3.bf16.msra.mxu1 %v3846_v22 }
 0x1e0   :  { %3851 = vmatprep.subr.bf16.mxu1 %v4065_v6 }
 0x25c   :  { %v398_v33 = vpop.xlane.xlu0 %397 }
 0x25d   :  { %v399_v34 = vsub.f32 %v395_v30, %v398_v33  ;;  %v3852_v30 = vpack.c.bf16 %v481_v28, %v480_v27 }
 0x25f   :  { %v400_v35 = vmul.f32 1.442695, %v399_v34 }
 0x261   :  { %3999 = vpow2.f32 %v400_v35 }
 0x26b   :  { %v4000_v36 = vpop.eup %3999 }
 0x26c   :  { %v402_v37 = vsel %vm315_vm2, %v4000_v36, 0.0 }
 0x26d   :  { %403 = vadd.xlane.f32.xlu0 %v402_v37 }
 0x2fa   :  { %v404_v50 = vpop.xlane.xlu0 %403 }
 0x2fb   :  { %4001 = vrcp.f32 %v404_v50 }
 0x305   :  { %v4002_v53 = vpop.eup %4001 }
 0x306   :  { %v406_v54 = vmul.f32 %v4002_v53, %v4000_v36  ;;  %v1148_v53 = vld [vmem:[%s4790_s9 + $0x10] sm:$0xff] }
 0x308   :  { %3498 = vmatmul.mubr.msk.f32.vlgmr.msra.gmra.mrb[4].mxu0 %vm315_vm2, %v406_v54  ;;  %v3861_v54 = vpack.c.bf16 %v1147_v52, %v1146_v51 }
 0x309   :  { %3828 = vmatpush3.bf16.msra.mxu0 %v3825_v43  ;;  %3519 = vmatprep.mubr.msk.f32.mxu0 %vm77_vm0, %v4200_v5 }
 0x30a   :  { %3830 = vmatprep.subr.bf16.mxu0 %v3829_v55 }
 0x30d   :  { %3832 = vmatpush3.bf16.msra.mxu0 %v3829_v55  ;;  %v1149_v55 = vld [vmem:[%s4790_s9 + $0x18] sm:$0xff] }
 0x30e   :  { %3841 = vmatprep.subr.bf16.mxu0 %v4065_v6 }
 0x310   :  { %3520 = vmatmul.mubr.msk.f32.vlgmr.msra.gmra.mrb[6].mxu0 %vm77_vm0, %v4223_v15 }
 0x311   :  { %3537 = vmatprep.mubr.msk.f32.mxu0 %vm4066_vm1, %v4067_v11 }
 0x3db   :  { %v476_v58 = vpop.f32.mrb[4].mxu0 }
 0x3dc   :  { %v3499_v59 = vpop.f32.mrb[5].mxu0 }
 0x3e3   :  { %v3521_v60 = vpop.f32.mrb[6].mxu0 }
 0x3e4   :  { %v628_v61 = vpop.f32.mrb[7].mxu0 }
 0x3e5   :  { %v3842_v62 = vpack.c.bf16 %v3521_v60, %v628_v61 }
 0x3e7   :  { %3844 = vmatpush3.bf16.xpose.msk.msra.mxu0 %vm4241_vm3, %v3842_v62 }
 0x3e8   :  { %3848 = vmatprep.subr.bf16.mxu0 %v4065_v6 }
 0x3ee   :  { %3538 = vmatmul.mubr.msk.f32.vlgmr.msra.gmra.mrb[8].mxu0 %vm315_vm2, %v553_v56  ;;  %v3864_v56 = vpack.c.bf16 %v1149_v55, %v1148_v53  ;;  %v3220_v55 = vld [vmem:[%s4825_s3 + $0x40] sm:$0xff] }
 0x3ef   :  { %3551 = vmatprep.mubr.msk.f32.mxu0 %vm4066_vm1, %v4067_v11  ;;  %3850 = vmatpush3.bf16.msra.mxu0 %v3849_v25 }
 0x3f0   :  { %3854 = vmatprep.subr.bf16.mxu0 %v4065_v6 }
 0x4c1   :  { %v792_v7 = vpop.f32.mrb[8].mxu0 }
 0x4c2   :  { %v796_v8 = vmul.f32 0.25, %v792_v7  ;;  %v3539_v9 = vpop.f32.mrb[9].mxu0  ;;  %v1152_v7 = vld [vmem:[%s4790_s9 + $0x30] sm:$0xff] }
 0x4c4   :  { %v797_v10 = vsel %vm315_vm2, %v796_v8, -inf }
 0x4c5   :  { %798 = vmax.xlane.f32.xlu1 %v797_v10  ;;  %v3203_v10 = vld [vmem:[%s4789_s8] ss:$0 sm:$0xff] }
 0x552   :  { %v799_v12 = vpop.xlane.xlu1 %798 }
 0x553   :  { %v800_v13 = vsub.f32 %v796_v8, %v799_v12  ;;  %v1153_v8 = vld [vmem:[%s4790_s9 + $0x38] sm:$0xff] }
 0x554   :  { %v3870_v9 = vpack.c.bf16 %v1153_v8, %v1152_v7  ;;  %v3237_v8 = vld [vmem:[%s4820_s29 + $0x60] sm:$0xff] }
 0x555   :  { %v801_v14 = vmul.f32 1.442695, %v800_v13 }
 0x557   :  { %4003 = vpow2.f32 %v801_v14 }
 0x561   :  { %v4004_v17 = vpop.eup %4003 }
 0x562   :  { %v803_v18 = vsel %vm315_vm2, %v4004_v17, 0.0 }
 0x563   :  { %804 = vadd.xlane.f32.xlu1 %v803_v18  ;;  %v3205_v18 = vld [vmem:[%s4791_s10] ss:$0 sm:$0xff] }
 0x5f0   :  { %v805_v26 = vpop.xlane.xlu1 %804 }
 0x5f1   :  { %4005 = vrcp.f32 %v805_v26 }
 0x5fb   :  { %v4006_v29 = vpop.eup %4005 }
 0x5fc   :  { %v807_v31 = vmul.f32 %v4006_v29, %v4004_v17 }
 0x5fe   :  { %3545 = vmatmul.mubr.msk.f32.vlgmr.msra.gmra.mrb[8].mxu1 %vm315_vm2, %v807_v31  ;;  %v3210_v31 = vld [vmem:[%s4822_s27 + $0x48] sm:$0xff] }
 0x5ff   :  { %3853 = vmatpush3.bf16.msra.mxu1 %v3852_v30  ;;  %3558 = vmatprep.mubr.msk.f32.mxu1 %vm4066_vm1, %v4067_v11  ;;  %v3209_v30 = vld [vmem:[%s4822_s27 + $0x40] sm:$0xff] }
 0x600   :  { %3860 = vmatprep.subr.bf16.mxu1 %v4065_v6 }
 0x602   :  { %3559 = vmatmul.mubr.msk.f32.vlgmr.msra.gmra.mrb[10].mxu1 %vm315_vm2, %v476_v58  ;;  %v1151_v58 = vld [vmem:[%s4790_s9 + $0x28] sm:$0xff] }
 0x603   :  { %3588 = vmatprep.mubr.msk.f32.mxu1 %vm4066_vm1, %v4067_v11  ;;  %3862 = vmatpush3.bf16.msra.mxu1 %v3861_v54  ;;  %v3867_v59 = vpack.c.bf16 %v1151_v58, %v1150_v57  ;;  %v3222_v57 = vld [vmem:[%s4825_s3 + $0x50] sm:$0xff] }
 0x604   :  { %3863 = vmatprep.subr.bf16.mxu1 %v4065_v6 }
 0x607   :  { %3865 = vmatpush3.bf16.msra.mxu1 %v3864_v56  ;;  %v3221_v56 = vld [vmem:[%s4825_s3 + $0x48] sm:$0xff] }
 0x608   :  { %3866 = vmatprep.subr.bf16.mxu1 %v4065_v6  ;;  %v3886_v58 = vpack.c.bf16 %v3221_v56, %v3220_v55  ;;  %v3230_v56 = vld [vmem:[%s4826_s2 + $0x20] sm:$0xff] }
 0x60b   :  { %3868 = vmatpush3.bf16.msra.mxu1 %v3867_v59  ;;  %v3223_v59 = vld [vmem:[%s4825_s3 + $0x58] sm:$0xff] }
 0x60c   :  { %3869 = vmatprep.subr.bf16.mxu1 %v4065_v6 }
 0x60f   :  { %3871 = vmatpush3.bf16.msra.mxu1 %v3870_v9  ;;  %v3238_v9 = vld [vmem:[%s4820_s29 + $0x68] sm:$0xff] }
 0x610   :  { %3887 = vmatprep.subr.bf16.mxu1 %v3886_v58 }
 0x6d1   :  { %v877_v32 = vpop.f32.mrb[8].mxu1 }
 0x6d2   :  { %v3546_v33 = vpop.f32.mrb[9].mxu1  ;;  %3552 = vmatmul.mubr.msk.f32.vlgmr.msra.gmra.mrb[10].mxu0 %vm315_vm2, %v877_v32  ;;  %v3873_v32 = vpack.c.bf16 %v3210_v31, %v3209_v30 }
 0x6d3   :  { %3569 = vmatprep.mubr.msk.f32.mxu0 %vm4066_vm1, %v4067_v11  ;;  %3856 = vmatpush3.bf16.msra.mxu0 %v3855_v48  ;;  %v3211_v33 = vld [vmem:[%s4822_s27 + $0x50] sm:$0xff] }
 0x6d4   :  { %3857 = vmatprep.subr.bf16.mxu0 %v4065_v6 }
 0x6d5   :  { %v1026_v34 = vpop.f32.mrb[10].mxu1 }
 0x6d6   :  { %v3560_v35 = vpop.f32.mrb[11].mxu1 }
 0x7a5   :  { %v953_v36 = vpop.f32.mrb[10].mxu0 }
 0x7a6   :  { %v1027_v37 = vadd.f32 %v1026_v34, %v953_v36  ;;  %v3553_v38 = vpop.f32.mrb[11].mxu0  ;;  %v3212_v34 = vld [vmem:[%s4822_s27 + $0x58] sm:$0xff]  ;;  %v3214_v36 = vld [vmem:[%s4820_s29 + $0x40] sm:$0xff] }
 0x7a7   :  { %v3876_v35 = vpack.c.bf16 %v3212_v34, %v3211_v33 }
 0x7a8   :  { %v1030_v39 = vadd.f32 %v1027_v37, %v4228_v16  ;;  %v1063_v16 = vld [vmem:[%s4788_s7 + $0x10] sm:$0xff]  ;;  %v3215_v37 = vld [vmem:[%s4820_s29 + $0x48] sm:$0xff] }
 0x7a9   :  { %v3858_v50 = vpack.c.bf16 %v1064_v49, %v1063_v16  ;;  %v3878_v38 = vpack.c.bf16 %v3215_v37, %v3214_v36  ;;  %v3882_v49 = vpack.c.bf16 %v3217_v47, %v3216_v46  ;;  %v3245_v37 = vld [vmem:[%s4825_s3 + $0x70] sm:$0xff] }
 0x7aa   :  { %v1033_v40 = vsel %vm77_vm0, %v1030_v39, 0.0 }
 0x7ab   :  { %1034 = vadd.xlane.f32.xlu0 %v1033_v40  ;;  %3859 = vmatpush3.bf16.msra.mxu0 %v3858_v50 }
 0x7ac   :  { %3872 = vmatprep.subr.bf16.mxu0 %v4065_v6 }
 0x838   :  { %v1035_v41 = vpop.xlane.xlu0 %1034 }
 0x839   :  { %v1037_v42 = vmul.f32 0.03125, %v1035_v41 }
 0x83b   :  { %v1038_v43 = vsub.f32 %v1030_v39, %v1037_v42 }
 0x83d   :  { %v1039_v44 = vmul.f32 %v1038_v43, %v1038_v43 }
 0x83f   :  { %v1040_v45 = vsel %vm77_vm0, %v1039_v44, 0.0 }
 0x840   :  { %1041 = vadd.xlane.f32.xlu1 %v1040_v45  ;;  %v3208_v45 = vld [vmem:[%s4793_s12] ss:$0 sm:$0xff] }
 0x8cd   :  { %v1042_v60 = vpop.xlane.xlu1 %1041 }
 0x8ce   :  { %v1043_v61 = vmul.f32 0.03125, %v1042_v60  ;;  %v3890_v60 = vpack.c.bf16 %v3223_v59, %v3222_v57  ;;  %v3231_v57 = vld [vmem:[%s4826_s2 + $0x28] sm:$0xff] }
 0x8cf   :  { %v3934_v59 = vpack.c.bf16 %v3231_v57, %v3230_v56  ;;  %v2459_v56 = vld [vmem:[%s4794_s13] sm:$0xff]  ;;  %v2460_v57 = vld [vmem:[%s4794_s13 + $0x8] sm:$0xff] }
 0x8d0   :  { %v1044_v62 = vadd.f32 1e-06, %v1043_v61 }
 0x8d2   :  { %4007 = vrsqrt.f32 %v1044_v62 }
 0x8dc   :  { %v4008_v63 = vpop.eup %4007 }
 0x8dd   :  { %v1046_v1 = vmul.f32 %v4008_v63, %v1038_v43  ;;  %v3207_v43 = vld [vmem:[%s4792_s11] ss:$0 sm:$0xff] }
 0x8df   :  { %v1053_v3 = vmul.f32 %v3201_v0, %v1046_v1 }
 0x8e1   :  { %v1060_v4 = vadd.f32 %v3202_v2, %v1053_v3 }
 0x8e3   :  { %3570 = vmatmul.mubr.msk.f32.vlgmr.msra.gmra.mrb[12].mxu0 %vm77_vm0, %v1060_v4 }
 0x8e4   :  { %3599 = vmatprep.mubr.msk.f32.mxu0 %vm4066_vm1, %v4067_v11  ;;  %3874 = vmatpush3.bf16.msra.mxu0 %v3873_v32 }
 0x8e5   :  { %3875 = vmatprep.subr.bf16.mxu0 %v4065_v6 }
 0x8e8   :  { %3877 = vmatpush3.bf16.msra.mxu0 %v3876_v35 }
 0x8e9   :  { %3879 = vmatprep.subr.bf16.mxu0 %v3878_v38 }
 0x9b6   :  { %v1141_v12 = vpop.f32.mrb[12].mxu0 }
 0x9b7   :  { %v1142_v13 = vadd.f32 %v3203_v10, %v1141_v12  ;;  %v3571_v14 = vpop.f32.mrb[13].mxu0  ;;  %v3907_v10 = vpack.c.bf16 %v3238_v9, %v3237_v8  ;;  %v3239_v12 = vld [vmem:[%s4820_s29 + $0x70] sm:$0xff] }
 0x9b9   :  { %v1145_v17 = vmax.f32 %v1142_v13, 0.0  ;;  %v3240_v13 = vld [vmem:[%s4820_s29 + $0x78] sm:$0xff] }
 0x9ba   :  { %v3911_v14 = vpack.c.bf16 %v3240_v13, %v3239_v12 }
 0x9bb   :  { %3589 = vmatmul.mubr.msk.f32.vlgmr.msra.gmra.mrb[12].mxu1 %vm1161_vm4, %v1145_v17 }
 0x9bc   :  { %3621 = vmatprep.mubr.msk.f32.mxu1 %vm77_vm0, %v4200_v5  ;;  %3889 = vmatpush3.bf16.msra.mxu1 %v3886_v58 }
 0x9bd   :  { %3891 = vmatprep.subr.bf16.mxu1 %v3890_v60 }
 0x9c0   :  { %3893 = vmatpush3.bf16.msra.mxu1 %v3890_v60 }
 0x9c1   :  { %3898 = vmatprep.subr.bf16.mxu1 %v4065_v6 }
 0x9c3   :  { %3622 = vmatmul.mubr.msk.f32.vlgmr.msra.gmra.mrb[14].mxu1 %vm77_vm0, %v4223_v15 }
 0x9c4   :  { %3635 = vmatprep.mubr.msk.f32.mxu1 %vm4066_vm1, %v4067_v11 }
 0xa8e   :  { %v1231_v20 = vpop.f32.mrb[12].mxu1 }
 0xa8f   :  { %v1232_v21 = vadd.f32 %v3205_v18, %v1231_v20  ;;  %v3590_v22 = vpop.f32.mrb[13].mxu1 }
 0xa90   :  { %v3232_v22 = vld [vmem:[%s4822_s27 + $0x60] sm:$0xff] }
 0xa91   :  { %v1235_v23 = vadd.f32 %v1232_v21, %v1060_v4 }
 0xa93   :  { %v1238_v24 = vsel %vm77_vm0, %v1235_v23, 0.0 }
 0xa94   :  { %1239 = vadd.xlane.f32.xlu0 %v1238_v24 }
 0xa96   :  { %v3623_v17 = vpop.f32.mrb[14].mxu1 }
 0xa97   :  { %v1494_v18 = vpop.f32.mrb[15].mxu1 }
 0xa98   :  { %v3899_v20 = vpack.c.bf16 %v3623_v17, %v1494_v18  ;;  %v3262_v17 = vld [vmem:[%s4788_s7 + $0x28] sm:$0xff] }
 0xa9a   :  { %3900 = vmatpush3.bf16.msra.mxu1 %v3899_v20  ;;  %v3264_v20 = vld [vmem:[%s4788_s7 + $0x38] sm:$0xff] }
 0xa9b   :  { %3901 = vmatprep.subr.bf16.mxu1 %v4065_v6 }
 0xb21   :  { %v1240_v25 = vpop.xlane.xlu0 %1239 }
 0xb22   :  { %v1241_v26 = vmul.f32 0.03125, %v1240_v25 }
 0xb24   :  { %v1242_v27 = vsub.f32 %v1235_v23, %v1241_v26  ;;  %v3233_v23 = vld [vmem:[%s4822_s27 + $0x68] sm:$0xff] }
 0xb25   :  { %v3902_v25 = vpack.c.bf16 %v3233_v23, %v3232_v22  ;;  %v3268_v22 = vld [vmem:[%s4790_s9 + $0x40] sm:$0xff]  ;;  %v3269_v23 = vld [vmem:[%s4790_s9 + $0x48] sm:$0xff] }
 0xb26   :  { %v1243_v28 = vmul.f32 %v1242_v27, %v1242_v27 }
 0xb28   :  { %v1244_v29 = vsel %vm77_vm0, %v1243_v28, 0.0  ;;  %v3235_v28 = vld [vmem:[%s4822_s27 + $0x78] sm:$0xff] }
 0xb29   :  { %1245 = vadd.xlane.f32.xlu1 %v1244_v29 }
 0xbb6   :  { %v1246_v39 = vpop.xlane.xlu1 %1245 }
 0xbb7   :  { %v1247_v40 = vmul.f32 0.03125, %v1246_v39  ;;  %v3246_v39 = vld [vmem:[%s4825_s3 + $0x78] sm:$0xff] }
 0xbb9   :  { %v1248_v41 = vadd.f32 1e-06, %v1247_v40  ;;  %v3919_v40 = vpack.c.bf16 %v3246_v39, %v3245_v37  ;;  %v3275_v39 = vld [vmem:[%s4790_s9 + $0x78] sm:$0xff] }
 0xbbb   :  { %4009 = vrsqrt.f32 %v1248_v41 }
 0xbc5   :  { %v4010_v42 = vpop.eup %4009 }
 0xbc6   :  { %v1250_v44 = vmul.f32 %v4010_v42, %v1242_v27  ;;  %v3234_v27 = vld [vmem:[%s4822_s27 + $0x70] sm:$0xff] }
 0xbc7   :  { %v3905_v29 = vpack.c.bf16 %v3235_v28, %v3234_v27  ;;  %v3272_v28 = vld [vmem:[%s4790_s9 + $0x60] sm:$0xff] }
 0xbc8   :  { %v1257_v48 = vmul.f32 %v3207_v43, %v1250_v44 }
 0xbca   :  { %v4451_v16 = vadd.f32 %v3208_v45, %v1257_v48 }
 0xbcc   :  { %3600 = vmatmul.mubr.msk.f32.vlgmr.msra.gmra.mrb[14].mxu0 %vm77_vm0, %v4451_v16 }
 0xbcd   :  { %3881 = vmatpush3.bf16.msra.mxu0 %v3878_v38  ;;  %3610 = vmatprep.mubr.msk.f32.mxu0 %vm77_vm0, %v4200_v5 }
 0xbce   :  { %3883 = vmatprep.subr.bf16.mxu0 %v3882_v49 }
 0xbd1   :  { %3885 = vmatpush3.bf16.msra.mxu0 %v3882_v49 }
 0xbd2   :  { %3894 = vmatprep.subr.bf16.mxu0 %v4065_v6 }
 0xbd4   :  { %3611 = vmatmul.mubr.msk.f32.vlgmr.msra.gmra.mrb[16].mxu0 %vm77_vm0, %v4223_v15 }
 0xbd5   :  { %3628 = vmatprep.mubr.msk.f32.mxu0 %vm4066_vm1, %v4067_v11 }
 0xc9f   :  { %v1339_v50 = vpop.f32.mrb[14].mxu0 }
 0xca0   :  { %v3601_v51 = vpop.f32.mrb[15].mxu0 }
 0xca7   :  { %v3612_v52 = vpop.f32.mrb[16].mxu0 }
 0xca8   :  { %v1414_v53 = vpop.f32.mrb[17].mxu0 }
 0xca9   :  { %v3895_v54 = vpack.c.bf16 %v3612_v52, %v1414_v53  ;;  %v3253_v52 = vld [vmem:[%s4826_s2 + $0x30] sm:$0xff]  ;;  %v3254_v53 = vld [vmem:[%s4826_s2 + $0x38] sm:$0xff] }
 0xcab   :  { %3897 = vmatpush3.bf16.xpose.msk.msra.mxu0 %vm4241_vm3, %v3895_v54  ;;  %v3931_v54 = vpack.c.bf16 %v3254_v53, %v3253_v52 }
 0xcac   :  { %3908 = vmatprep.subr.bf16.mxu0 %v3907_v10 }
 0xcb2   :  { %3629 = vmatmul.mubr.msk.f32.vlgmr.msra.gmra.mrb[18].mxu0 %vm315_vm2, %v1339_v50 }
 0xcb3   :  { %3657 = vmatprep.mubr.msk.f32.mxu0 %vm77_vm0, %v4200_v5  ;;  %3910 = vmatpush3.bf16.msra.mxu0 %v3907_v10 }
 0xcb4   :  { %3912 = vmatprep.subr.bf16.mxu0 %v3911_v14 }
 0xcb7   :  { %3914 = vmatpush3.bf16.msra.mxu0 %v3911_v14  ;;  %v3261_v14 = vld [vmem:[%s4788_s7 + $0x20] sm:$0xff] }
 0xcb8   :  { %3923 = vmatprep.subr.bf16.mxu0 %v4065_v6  ;;  %v3937_v18 = vpack.c.bf16 %v3262_v17, %v3261_v14 }
 0xcba   :  { %3658 = vmatmul.mubr.msk.f32.vlgmr.msra.gmra.mrb[20].mxu0 %vm77_vm0, %v4223_v15 }
 0xcbb   :  { %3675 = vmatprep.mubr.msk.f32.mxu0 %vm4066_vm1, %v4067_v11 }
 0xd85   :  { %v1578_v61 = vpop.f32.mrb[18].mxu0 }
 0xd86   :  { %v1582_v62 = vmul.f32 0.25, %v1578_v61  ;;  %v3630_v63 = vpop.f32.mrb[19].mxu0 }
 0xd88   :  { %v1583_v0 = vsel %vm315_vm2, %v1582_v62, -inf }
 0xd89   :  { %1584 = vmax.xlane.f32.xlu0 %v1583_v0 }
 0xd8d   :  { %v3659_v30 = vpop.f32.mrb[20].mxu0 }
 0xd8e   :  { %v1816_v31 = vpop.f32.mrb[21].mxu0 }
 0xd8f   :  { %v3924_v32 = vpack.c.bf16 %v3659_v30, %v1816_v31 }
 0xd91   :  { %3926 = vmatpush3.bf16.xpose.msk.msra.mxu0 %vm4241_vm3, %v3924_v32 }
 0xd92   :  { %3930 = vmatprep.subr.bf16.mxu0 %v4065_v6 }
 0xe16   :  { %v1585_v1 = vpop.xlane.xlu0 %1584 }
 0xe17   :  { %v1586_v2 = vsub.f32 %v1582_v62, %v1585_v1 }
 0xe19   :  { %v1587_v3 = vmul.f32 1.442695, %v1586_v2 }
 0xe1b   :  { %4011 = vpow2.f32 %v1587_v3 }
 0xe25   :  { %v4012_v4 = vpop.eup %4011 }
 0xe26   :  { %v1589_v7 = vsel %vm315_vm2, %v4012_v4, 0.0 }
 0xe27   :  { %1590 = vadd.xlane.f32.xlu1 %v1589_v7 }
 0xeb4   :  { %v1591_v21 = vpop.xlane.xlu1 %1590 }
 0xeb5   :  { %4013 = vrcp.f32 %v1591_v21 }
 0xebf   :  { %v4014_v24 = vpop.eup %4013 }
 0xec0   :  { %v1593_v26 = vmul.f32 %v4014_v24, %v4012_v4  ;;  %v3270_v24 = vld [vmem:[%s4790_s9 + $0x50] sm:$0xff] }
 0xec2   :  { %3636 = vmatmul.mubr.msk.f32.vlgmr.msra.gmra.mrb[16].mxu1 %vm315_vm2, %v1593_v26  ;;  %v3271_v26 = vld [vmem:[%s4790_s9 + $0x58] sm:$0xff] }
 0xec3   :  { %3903 = vmatpush3.bf16.msra.mxu1 %v3902_v25  ;;  %3646 = vmatprep.mubr.msk.f32.mxu1 %vm4066_vm1, %v4067_v11  ;;  %v3943_v25 = vpack.c.bf16 %v3269_v23, %v3268_v22  ;;  %v3946_v27 = vpack.c.bf16 %v3271_v26, %v3270_v24 }
 0xec4   :  { %3904 = vmatprep.subr.bf16.mxu1 %v4065_v6 }
 0xec7   :  { %3906 = vmatpush3.bf16.msra.mxu1 %v3905_v29  ;;  %v3273_v29 = vld [vmem:[%s4790_s9 + $0x68] sm:$0xff] }
 0xec8   :  { %v3949_v30 = vpack.c.bf16 %v3273_v29, %v3272_v28  ;;  %v4068_v28 = vmov 0  }
 0xec9   :  { %3998 = vset.pattern.permute.xlu0 %v4068_v28 }
 0xeca   :  { %3647 = vmatmul.mubr.msk.f32.vlgmr.msra.gmra.mrb[18].mxu1 %vm77_vm0, %v4451_v16 }
 0xecb   :  { %3668 = vmatprep.mubr.msk.f32.mxu1 %vm77_vm0, %v4200_v5  ;;  %v3243_v5 = vld [vmem:[%s4825_s3 + $0x60] sm:$0xff] }
 0xecc   :  { %v3915_v38 = vpack.c.bf16 %v3244_v19, %v3243_v5  ;;  %v3260_v5 = vld [vmem:[%s4828_s30 + $0x1] ss:$0 sm:$0xff] }
 0xece   :  { %3916 = vmatprep.subr.bf16.mxu1 %v3915_v38 }
 0xecf   :  { %3918 = vmatpush3.bf16.msra.mxu1 %v3915_v38  ;;  %v3274_v38 = vld [vmem:[%s4790_s9 + $0x70] sm:$0xff] }
 0xed0   :  { %3920 = vmatprep.subr.bf16.mxu1 %v3919_v40 }
 0xed3   :  { %3922 = vmatpush3.bf16.msra.mxu1 %v3919_v40  ;;  %v3952_v40 = vpack.c.bf16 %v3275_v39, %v3274_v38 }
 0xed4   :  { %3927 = vmatprep.subr.bf16.mxu1 %v4065_v6 }
 0xed6   :  { %3669 = vmatmul.mubr.msk.f32.vlgmr.msra.gmra.mrb[20].mxu1 %vm77_vm0, %v4223_v15 }
 0xed7   :  { %3682 = vmatprep.mubr.msk.f32.mxu1 %vm4066_vm1, %v4067_v11 }
 0xf95   :  { %v1663_v33 = vpop.f32.mrb[16].mxu1 }
 0xf96   :  { %v3637_v34 = vpop.f32.mrb[17].mxu1 }
 0xf9d   :  { %v1741_v35 = vpop.f32.mrb[18].mxu1 }
 0xf9e   :  { %v3648_v36 = vpop.f32.mrb[19].mxu1  ;;  %3676 = vmatmul.mubr.msk.f32.vlgmr.msra.gmra.mrb[22].mxu0 %vm315_vm2, %v1741_v35  ;;  %v3259_v35 = vld [vmem:[%s4827_s6 + $0x1] ss:$0 sm:$0xff] }
 0xf9f   :  { %3689 = vmatprep.mubr.msk.f32.mxu0 %vm4066_vm1, %v4067_v11  ;;  %3932 = vmatpush3.bf16.msra.mxu0 %v3931_v54 }
 0xfa0   :  { %3936 = vmatprep.subr.bf16.mxu0 %v4065_v6 }
 0xfa9   :  { %v3670_v50 = vpop.f32.mrb[20].mxu1 }
 0xfaa   :  { %v1896_v51 = vpop.f32.mrb[21].mxu1 }
 0xfab   :  { %v3928_v15 = vpack.c.bf16 %v3670_v50, %v1896_v51 }
 0xfad   :  { %3929 = vmatpush3.bf16.msra.mxu1 %v3928_v15 }
 0xfae   :  { %3933 = vmatprep.subr.bf16.mxu1 %v4065_v6 }
0x1071   :  { %v1980_v41 = vpop.f32.mrb[22].mxu0 }
0x1072   :  { %v1984_v42 = vmul.f32 0.25, %v1980_v41  ;;  %v3677_v43 = vpop.f32.mrb[23].mxu0  ;;  %v3266_v41 = vld [vmem:[%s4789_s8 + $0x1] ss:$0 sm:$0xff] }
0x1074   :  { %v1985_v44 = vsel %vm315_vm2, %v1984_v42, -inf }
0x1075   :  { %1986 = vmax.xlane.f32.xlu0 %v1985_v44 }
0x1102   :  { %v1987_v45 = vpop.xlane.xlu0 %1986 }
0x1103   :  { %v1988_v46 = vsub.f32 %v1984_v42, %v1987_v45 }
0x1105   :  { %v1989_v47 = vmul.f32 1.442695, %v1988_v46  ;;  %v3277_v46 = vld [vmem:[%s4791_s10 + $0x1] ss:$0 sm:$0xff] }
0x1107   :  { %4015 = vpow2.f32 %v1989_v47 }
0x1111   :  { %v4016_v48 = vpop.eup %4015 }
0x1112   :  { %v1991_v49 = vsel %vm315_vm2, %v4016_v48, 0.0 }
0x1113   :  { %1992 = vadd.xlane.f32.xlu1 %v1991_v49 }
0x11a0   :  { %v1993_v55 = vpop.xlane.xlu1 %1992 }
0x11a1   :  { %4017 = vrcp.f32 %v1993_v55 }
0x11ab   :  { %v4018_v58 = vpop.eup %4017 }
0x11ac   :  { %v1995_v60 = vmul.f32 %v4018_v58, %v4016_v48  ;;  %v3955_v58 = vpack.c.bf16 %v2460_v57, %v2459_v56 }
0x11ae   :  { %3683 = vmatmul.mubr.msk.f32.vlgmr.msra.gmra.mrb[22].mxu1 %vm315_vm2, %v1995_v60  ;;  %v2462_v60 = vld [vmem:[%s4794_s13 + $0x18] sm:$0xff] }
0x11af   :  { %3935 = vmatpush3.bf16.msra.mxu1 %v3934_v59  ;;  %3696 = vmatprep.mubr.msk.f32.mxu1 %vm4066_vm1, %v4067_v11  ;;  %v2461_v59 = vld [vmem:[%s4794_s13 + $0x10] sm:$0xff] }
0x11b0   :  { %3942 = vmatprep.subr.bf16.mxu1 %v4065_v6 }
0x11b2   :  { %3697 = vmatmul.mubr.msk.f32.vlgmr.msra.gmra.mrb[24].mxu1 %vm315_vm2, %v1663_v33 }
0x11b3   :  { %3726 = vmatprep.mubr.msk.f32.mxu1 %vm4066_vm1, %v4067_v11  ;;  %3944 = vmatpush3.bf16.msra.mxu1 %v3943_v25 }
0x11b4   :  { %3945 = vmatprep.subr.bf16.mxu1 %v4065_v6 }
0x11b7   :  { %3947 = vmatpush3.bf16.msra.mxu1 %v3946_v27 }
0x11b8   :  { %3948 = vmatprep.subr.bf16.mxu1 %v4065_v6 }
0x11bb   :  { %3950 = vmatpush3.bf16.msra.mxu1 %v3949_v30 }
0x11bc   :  { %3951 = vmatprep.subr.bf16.mxu1 %v4065_v6 }
0x11bf   :  { %3953 = vmatpush3.bf16.msra.mxu1 %v3952_v40 }
0x11c0   :  { %3966 = vmatprep.subr.bf16.mxu1 %v4065_v6 }
0x1281   :  { %v2065_v61 = vpop.f32.mrb[22].mxu1 }
0x1282   :  { %v3684_v62 = vpop.f32.mrb[23].mxu1  ;;  %3690 = vmatmul.mubr.msk.f32.vlgmr.msra.gmra.mrb[24].mxu0 %vm315_vm2, %v2065_v61  ;;  %v3958_v61 = vpack.c.bf16 %v2462_v60, %v2461_v59 }
0x1283   :  { %3707 = vmatprep.mubr.msk.f32.mxu0 %vm4066_vm1, %v4067_v11  ;;  %3938 = vmatpush3.bf16.msra.mxu0 %v3937_v18 }
0x1284   :  { %3939 = vmatprep.subr.bf16.mxu0 %v4065_v6 }
0x1285   :  { %v2214_v63 = vpop.f32.mrb[24].mxu1 }
0x1286   :  { %v3698_v0 = vpop.f32.mrb[25].mxu1 }
0x1355   :  { %v2141_v1 = vpop.f32.mrb[24].mxu0 }
0x1356   :  { %v2215_v2 = vadd.f32 %v2214_v63, %v2141_v1  ;;  %v3691_v3 = vpop.f32.mrb[25].mxu0 }
0x1358   :  { %v2218_v4 = vadd.f32 %v2215_v2, %v4451_v16  ;;  %v3263_v16 = vld [vmem:[%s4788_s7 + $0x30] sm:$0xff]  ;;  %v3281_v2 = vld [vmem:[%s4792_s11 + $0x1] ss:$0 sm:$0xff] }
0x1359   :  { %v3940_v21 = vpack.c.bf16 %v3264_v20, %v3263_v16  ;;  %v72_v16 = vld [vmem:[%s4821_s25 + $0x18] sm:$0xff] }
0x135a   :  { %v2223_v7 = vsel %vm77_vm0, %v2218_v4, 0.0  ;;  %v2588_v22 = vsel %vm77_vm0, %v72_v16, 0.0 }
0x135b   :  { %2224 = vadd.xlane.f32.xlu0 %v2223_v7  ;;  %3941 = vmatpush3.bf16.msra.mxu0 %v3940_v21 }
0x135c   :  { %3954 = vmatprep.subr.bf16.mxu0 %v4065_v6 }
0x13e8   :  { %v2225_v8 = vpop.xlane.xlu0 %2224 }
0x13e9   :  { %v2226_v9 = vmul.f32 0.03125, %v2225_v8 }
0x13eb   :  { %v2227_v10 = vsub.f32 %v2218_v4, %v2226_v9  ;;  %v3282_v4 = vld [vmem:[%s4793_s12 + $0x1] ss:$0 sm:$0xff]  ;;  %v2544_v9 = vlaneseq }
0x13ed   :  { %v2228_v12 = vmul.f32 %v2227_v10, %v2227_v10 }
0x13ef   :  { %v2229_v13 = vsel %vm77_vm0, %v2228_v12, 0.0 }
0x13f0   :  { %2230 = vadd.xlane.f32.xlu1 %v2229_v13 }
0x147d   :  { %v2231_v31 = vpop.xlane.xlu1 %2230 }
0x147e   :  { %v2232_v32 = vmul.f32 0.03125, %v2231_v31 }
0x1480   :  { %v2233_v33 = vadd.f32 1e-06, %v2232_v32 }
0x1482   :  { %4019 = vrsqrt.f32 %v2233_v33 }
0x148c   :  { %v4020_v34 = vpop.eup %4019 }
0x148d   :  { %v2235_v36 = vmul.f32 %v4020_v34, %v2227_v10  ;;  %v4664_v10 = vshrl.u32 %v2544_v9, 7 }
0x148f   :  { %v2242_v19 = vmul.f32 %v3259_v35, %v2235_v36  ;;  %v2546_v12 = vcvt.s32.f32 %v4664_v10  ;;  %v2769_v10 = vld [vmem:[%s4799_s18] sm:$0xff] }
0x1491   :  { %v2249_v37 = vadd.f32 %v3260_v5, %v2242_v19 }
0x1493   :  { %3708 = vmatmul.mubr.msk.f32.vlgmr.msra.gmra.mrb[26].mxu0 %vm77_vm0, %v2249_v37 }
0x1494   :  { %3737 = vmatprep.mubr.msk.f32.mxu0 %vm4066_vm1, %v4067_v11  ;;  %3956 = vmatpush3.bf16.msra.mxu0 %v3955_v58 }
0x1495   :  { %3957 = vmatprep.subr.bf16.mxu0 %v4065_v6 }
0x1498   :  { %3959 = vmatpush3.bf16.msra.mxu0 %v3958_v61 }
0x1499   :  { %3960 = vmatprep.subr.bf16.mxu0 %v4065_v6 }
0x1566   :  { %v2332_v42 = vpop.f32.mrb[26].mxu0 }
0x1567   :  { %v2333_v43 = vadd.f32 %v3266_v41, %v2332_v42  ;;  %v3709_v44 = vpop.f32.mrb[27].mxu0 }
0x1569   :  { %v2336_v45 = vmax.f32 %v2333_v43, 0.0 }
0x156b   :  { %3727 = vmatmul.mubr.msk.f32.vlgmr.msra.gmra.mrb[26].mxu1 %vm1161_vm4, %v2336_v45  ;;  %v2692_v45 = vld [vmem:[%s4798_s17] sm:$0xff] }
0x156c   :  { %3759 = vmatprep.mubr.msk.f32.mxu1 %vm4066_vm1, %v4067_v11 }
0x163e   :  { %v2423_v47 = vpop.f32.mrb[26].mxu1 }
0x163f   :  { %v2424_v48 = vadd.f32 %v3277_v46, %v2423_v47  ;;  %v3728_v49 = vpop.f32.mrb[27].mxu1  ;;  %v2693_v46 = vld [vmem:[%s4798_s17 + $0x8] sm:$0xff] }
0x1640   :  { %v3967_v47 = vpack.c.bf16 %v2693_v46, %v2692_v45  ;;  %v2694_v49 = vld [vmem:[%s4798_s17 + $0x10] sm:$0xff] }
0x1641   :  { %v2427_v50 = vadd.f32 %v2424_v48, %v2249_v37 }
0x1642   :  { %3968 = vmatpush3.bf16.msra.mxu1 %v3967_v47 }
0x1643   :  { %v2432_v51 = vsel %vm77_vm0, %v2427_v50, 0.0  ;;  %3969 = vmatprep.subr.bf16.mxu1 %v4065_v6 }
0x1644   :  { %2433 = vadd.xlane.f32.xlu0 %v2432_v51 }
0x16d1   :  { %v2434_v15 = vpop.xlane.xlu0 %2433 }
0x16d2   :  { %v2435_v52 = vmul.f32 0.03125, %v2434_v15  ;;  %v2615_v15 = vld [vmem:[%s4797_s16] sm:$0xff] }
0x16d4   :  { %v2436_v53 = vsub.f32 %v2427_v50, %v2435_v52  ;;  %v2695_v50 = vld [vmem:[%s4798_s17 + $0x18] sm:$0xff]  ;;  %v2616_v52 = vld [vmem:[%s4797_s16 + $0x8] sm:$0xff] }
0x16d5   :  { %v3970_v51 = vpack.c.bf16 %v2695_v50, %v2694_v49 }
0x16d6   :  { %v2437_v54 = vmul.f32 %v2436_v53, %v2436_v53 }
0x16d7   :  { %3971 = vmatpush3.bf16.msra.mxu1 %v3970_v51 }
0x16d8   :  { %v2438_v55 = vsel %vm77_vm0, %v2437_v54, 0.0  ;;  %3773 = vmatprep.subr.mxu1 %v4067_v11  ;;  %v3961_v54 = vpack.c.bf16 %v2616_v52, %v2615_v15 }
0x16d9   :  { %2439 = vadd.xlane.f32.xlu1 %v2438_v55  ;;  %v2618_v55 = vld [vmem:[%s4797_s16 + $0x18] sm:$0xff] }
0x1766   :  { %v2440_v62 = vpop.xlane.xlu1 %2439 }
0x1767   :  { %v2441_v63 = vmul.f32 0.03125, %v2440_v62 }
0x1769   :  { %v2442_v0 = vadd.f32 1e-06, %v2441_v63 }
0x176b   :  { %4021 = vrsqrt.f32 %v2442_v0 }
0x1775   :  { %v4022_v1 = vpop.eup %4021 }
0x1776   :  { %v2444_v3 = vmul.f32 %v4022_v1, %v2436_v53  ;;  %v2617_v53 = vld [vmem:[%s4797_s16 + $0x10] sm:$0xff] }
0x1777   :  { %v3964_v56 = vpack.c.bf16 %v2618_v55, %v2617_v53 }
0x1778   :  { %v2451_v7 = vmul.f32 %v3281_v2, %v2444_v3  ;;  %v3285_v2 = vld [vmem:[%s4795_s14] ss:$0 sm:$0xff] }
0x177a   :  { %v4658_v8 = vadd.f32 %v3282_v4, %v2451_v7  ;;  %v3286_v4 = vld [vmem:[%s4796_s15] ss:$0 sm:$0xff] }
0x177c   :  { %3738 = vmatmul.mubr.msk.f32.vlgmr.msra.gmra.mrb[28].mxu0 %vm77_vm0, %v4658_v8 }
0x177d   :  { %3748 = vmatprep.mubr.msk.f32.mxu0 %vm4066_vm1, %v4067_v11  ;;  %3962 = vmatpush3.bf16.msra.mxu0 %v3961_v54 }
0x177e   :  { %3963 = vmatprep.subr.bf16.mxu0 %v4065_v6 }
0x1781   :  { %3965 = vmatpush3.bf16.msra.mxu0 %v3964_v56 }
0x1782   :  { %3972 = vmatprep.subr.bf16.mxu0 %v4065_v6 }
0x184f   :  { %v2532_v13 = vpop.f32.mrb[28].mxu0 }
0x1850   :  { %v2536_v14 = vsub.f32 0.0, %v2532_v13  ;;  %vm2547_vm6 = vcmp.ne.f32.partialorder %v2532_v13, 0.0  ;;  %v3739_v17 = vpop.f32.mrb[29].mxu0 }
0x1851   :  { %v2548_v18 = vsel %vm2547_vm6, %v2546_v12, 8.0 }
0x1852   :  { %v2537_v20 = vmul.f32 1.442695, %v2536_v14  ;;  %v2550_v21 = vsel %vm2549_vm5, %v2548_v18, inf  ;;  %v2771_v18 = vld [vmem:[%s4799_s18 + $0x10] sm:$0xff] }
0x1853   :  { %2551 = vmin.xlane.f32.xlu0 %v2550_v21 }
0x1854   :  { %4023 = vpow2.f32 %v2537_v20 }
0x1857   :  { %2589 = vadd.xlane.f32.xlu0 %v2588_v22 }
0x185e   :  { %v4024_v23 = vpop.eup %4023 }
0x185f   :  { %v2539_v24 = vadd.f32 1.0, %v4024_v23 }
0x1861   :  { %4025 = vrcp.f32 %v2539_v24 }
0x186b   :  { %v4026_v25 = vpop.eup %4025 }
0x186c   :  { %vm2542_vm7 = vcmp.gt.f32.partialorder %v4026_v25, 0.5 }
0x186d   :  { %v2543_v26 = vsel %vm2542_vm7, 1.0, %v4067_v11 }
0x186e   :  { %v2564_v27 = vsel %vm2549_vm5, %v2543_v26, 0.0 }
0x186f   :  { %2565 = vadd.xlane.f32.xlu1 %v2564_v27 }
0x18e0   :  { %v2552_v29 = vpop.xlane.xlu0 %2551 }
0x18e1   :  { %v2553_v30 = vrot.slane %v2552_v29, 4 }
0x18e3   :  { %v2554_v31 = vmin.f32 %v2552_v29, %v2553_v30 }
0x18e4   :  { %v2590_v32 = vpop.xlane.xlu0 %2589 }
0x18e5   :  { %v2555_v33 = vrot.slane %v2554_v31, 2  ;;  %v2591_v34 = vmul.f32 0.03125, %v2590_v32 }
0x18e7   :  { %v2592_v35 = vsub.f32 %v72_v16, %v2591_v34  ;;  %v2556_v36 = vmin.f32 %v2554_v31, %v2555_v33  ;;  %v2772_v16 = vld [vmem:[%s4799_s18 + $0x18] sm:$0xff]  ;;  %v3006_v34 = vld [vmem:[%s4800_s19 + $0x8] sm:$0xff] }
0x18e8   :  { %v3976_v20 = vpack.c.bf16 %v2772_v16, %v2771_v18 }
0x18e9   :  { %v2593_v5 = vmul.f32 %v2592_v35, %v2592_v35  ;;  %v2557_v19 = vrot.slane %v2556_v36, 1 }
0x18eb   :  { %v2594_v37 = vsel %vm77_vm0, %v2593_v5, 0.0  ;;  %v2558_v38 = vmin.f32 %v2556_v36, %v2557_v19 }
0x18ec   :  { %2595 = vadd.xlane.f32.xlu1 %v2594_v37 }
0x18ed   :  { %3981 = vpush %v2558_v38 }
0x18fc   :  { %v2566_v39 = vpop.xlane.xlu1 %2565 }
0x18fd   :  { %v2567_v40 = vrot.slane %v2566_v39, 4 }
0x18ff   :  { %v2568_v41 = vadd.f32 %v2567_v40, %v2566_v39 }
0x1901   :  { %v2569_v42 = vrot.slane %v2568_v41, 2 }
0x1903   :  { %v2570_v43 = vadd.f32 %v2569_v42, %v2568_v41 }
0x1905   :  { %v2571_v44 = vrot.slane %v2570_v43, 1 }
0x1907   :  { %v2572_v48 = vadd.f32 %v2571_v44, %v2570_v43 }
0x1909   :  { %3983 = vpush %v2572_v48 }
0x191e   :  { %s3982_s17 = spop %3981 }
0x191f   :  { %v2560_v57 = vstv %s3982_s17 }
0x1920   :  { %vm2561_vm8 = vcmp.eq.f32.partialorder %v2546_v12, %v2560_v57  ;;  %v2770_v12 = vld [vmem:[%s4799_s18 + $0x8] sm:$0xff] }
0x1921   :  { %v3284_v58 = vsel %vm2561_vm8, 1.0, %v4067_v11  ;;  %v3973_v14 = vpack.c.bf16 %v2770_v12, %v2769_v10 }
0x193a   :  { %s3984_s5 = spop %3983 }
0x193b   :  { %p2574_p0 = scmp.lt.f32.partialorder %s3984_s5, 0.5 }
0x193d   :  { %s2575_s24 = scalar_select %p2574_p0, 1, 0 }
0x193f   :  { %s2576_s22 = scvt.s32.f32 %s2575_s24 }
0x1941   :  { %v2577_v59 = vstv %s2576_s22 }
0x1942   :  { %v2578_v60 = vmul.f32 %v3284_v58, %v2577_v59 }
0x1944   :  { %v4708_v61 = vadd.f32 %v2578_v60, %v2543_v26 }
0x1946   :  { %2582 = vperm.xlu0 %3998, %v4708_v61  }
0x1979   :  { %v2596_v62 = vpop.xlane.xlu1 %2595 }
0x197a   :  { %v2597_v63 = vmul.f32 0.03125, %v2596_v62 }
0x197c   :  { %v2598_v0 = vadd.f32 1e-06, %v2597_v63 }
0x197e   :  { %4027 = vrsqrt.f32 %v2598_v0 }
0x1988   :  { %v4028_v1 = vpop.eup %4027 }
0x1989   :  { %v2600_v3 = vmul.f32 %v4028_v1, %v2592_v35 }
0x198b   :  { %v2607_v7 = vmul.f32 %v3285_v2, %v2600_v3 }
0x198d   :  { %v2614_v9 = vadd.f32 %v3286_v4, %v2607_v7 }
0x198f   :  { %3760 = vmatmul.mubr.msk.f32.vlgmr.msra.gmra.mrb[28].mxu1 %vm77_vm0, %v2614_v9 }
0x1990   :  { %3775 = vmatprep.mubr.msk.f32.mxu1 %vm4066_vm1, %v4067_v11 }
0x19c5   :  { %v2583_v13 = vpop.permute.xlu0 %2582 }
0x19c6   :  { %v2585_v17 = vmul.f32 %v2583_v13, %v4658_v8 }
0x19c8   :  { %3749 = vmatmul.mubr.msk.f32.vlgmr.msra.gmra.mrb[30].mxu0 %vm77_vm0, %v2585_v17 }
0x19c9   :  { %3974 = vmatpush3.bf16.msra.mxu0 %v3973_v14  ;;  %3770 = vmatprep.mubr.msk.f32.mxu0 %vm4066_vm1, %v4067_v11 }
0x19ca   :  { %3975 = vmatprep.subr.bf16.mxu0 %v4065_v6 }
0x19cd   :  { %3977 = vmatpush3.bf16.msra.mxu0 %v3976_v20 }
0x19ce   :  { %3978 = vmatprep.subr.bf16.mxu0 %v4065_v6 }
0x19d0   :  { %3771 = vmatmul.mubr.msk.f32.vlgmr.msra.gmra.mrb[32].mxu0 %vm77_vm0, %v2614_v9 }
0x19d1   :  { %3787 = vmatprep.mubr.msk.f32.mxu0 %vm4066_vm1, %v4067_v11 }
0x1a62   :  { %v2765_v8 = vpop.f32.mrb[28].mxu1 }
0x1a63   :  { %v3761_v21 = vpop.f32.mrb[29].mxu1  ;;  %3774 = vmatpush3.xpose.msk.msra.mxu1 %vm315_vm2, %v2765_v8 }
0x1a64   :  { %3778 = vmatprep.subr.mxu1 %v4067_v11 }
0x1a9b   :  { %v2688_v22 = vpop.f32.mrb[30].mxu0 }
0x1a9c   :  { %v3750_v23 = vpop.f32.mrb[31].mxu0  ;;  %3776 = vmatmul.mubr.msk.f32.vlgmr.msra.gmra.mrb[30].mxu1 %vm315_vm2, %v2688_v22 }
0x1a9d   :  { %3780 = vmatprep.mubr.msk.f32.mxu1 %vm4066_vm1, %v4067_v11  ;;  %v3005_v11 = vld [vmem:[%s4800_s19] sm:$0xff] }
0x1a9e   :  { %v3979_v35 = vpack.c.bf16 %v3006_v34, %v3005_v11 }
0x1aa0   :  { %3980 = vmatpush3.bf16.msra.mxu0 %v3979_v35 }
0x1aa3   :  { %v2839_v24 = vpop.f32.mrb[32].mxu0 }
0x1aa4   :  { %v3772_v6 = vpop.f32.mrb[33].mxu0  ;;  %3779 = vmatpush3.msra.mxu1 %v2839_v24 }
0x1b6f   :  { %v2915_v25 = vpop.f32.mrb[30].mxu1 }
0x1b70   :  { %v2919_v26 = vmul.f32 0.25, %v2915_v25  ;;  %v3777_v27 = vpop.f32.mrb[31].mxu1 }
0x1b72   :  { %v2921_v28 = vsel %vm2920_vm9, %v2919_v26, -inf }
0x1b73   :  { %2922 = vmax.xlane.f32.xlu1 %v2921_v28 }
0x1c00   :  { %v2923_v29 = vpop.xlane.xlu1 %2922 }
0x1c01   :  { %v2924_v30 = vsub.f32 %v2919_v26, %v2923_v29 }
0x1c03   :  { %v2925_v31 = vmul.f32 1.442695, %v2924_v30 }
0x1c05   :  { %4029 = vpow2.f32 %v2925_v31 }
0x1c0f   :  { %v4030_v32 = vpop.eup %4029 }
0x1c10   :  { %v2927_v33 = vsel %vm2920_vm9, %v4030_v32, 0.0 }
0x1c11   :  { %2928 = vadd.xlane.f32.xlu1 %v2927_v33 }
0x1c9e   :  { %v2929_v36 = vpop.xlane.xlu1 %2928 }
0x1c9f   :  { %4031 = vrcp.f32 %v2929_v36 }
0x1ca9   :  { %v4032_v5 = vpop.eup %4031 }
0x1caa   :  { %v2931_v19 = vmul.f32 %v4032_v5, %v4030_v32 }
0x1cac   :  { %3781 = vmatmul.mubr.msk.f32.vlgmr.msra.gmra.mrb[32].mxu1 %vm2920_vm9, %v2931_v19 }
0x1d7f   :  { %v3001_v37 = vpop.f32.mrb[32].mxu1 }
0x1d80   :  { %v3782_v38 = vpop.f32.mrb[33].mxu1  ;;  %3788 = vmatmul.mubr.msk.f32.vlgmr.msra.gmra.mrb[34].mxu0 %vm315_vm2, %v3001_v37 }
0x1e53   :  { %v3076_v39 = vpop.f32.mrb[34].mxu0 }
0x1e54   :  { %v3789_v40 = vpop.f32.mrb[35].mxu0  ;;  %v3080_v41 = vsel %vm2549_vm5, %v3076_v39, -inf }
0x1e55   :  { %3081 = vmax.xlane.f32.xlu1 %v3080_v41 }
0x1ee2   :  { %v3082_v42 = vpop.xlane.xlu1 %3081 }
0x1ee3   :  { %v3083_v43 = vrot.slane %v3082_v42, 4 }
0x1ee5   :  { %v3084_v44 = vmax.f32 %v3082_v42, %v3083_v43 }
0x1ee7   :  { %v3085_v45 = vrot.slane %v3084_v44, 2 }
0x1ee9   :  { %v3086_v46 = vmax.f32 %v3084_v44, %v3085_v45 }
0x1eeb   :  { %v3087_v47 = vrot.slane %v3086_v46, 1 }
0x1eed   :  { %v3088_v48 = vmax.f32 %v3086_v46, %v3087_v47 }
0x1eef   :  { %3985 = vpush %v3088_v48 }
0x1f20   :  { %s3986_s19 = spop %3985 }
0x1f21   :  { %v3090_v49 = vstv %s3986_s19 }
0x1f22   :  { %v3091_v50 = vsub.f32 %v3076_v39, %v3090_v49 }
0x1f24   :  { %v3092_v51 = vmul.f32 1.442695, %v3091_v50 }
0x1f26   :  { %4033 = vpow2.f32 %v3092_v51 }
0x1f30   :  { %v4034_v15 = vpop.eup %4033 }
0x1f31   :  { %v3094_v52 = vsel %vm2549_vm5, %v4034_v15, 0.0 }
0x1f32   :  { %3095 = vadd.xlane.f32.xlu1 %v3094_v52 }
0x1fbf   :  { %v3096_v53 = vpop.xlane.xlu1 %3095 }
0x1fc0   :  { %v3097_v54 = vrot.slane %v3096_v53, 4 }
0x1fc2   :  { %v3098_v55 = vadd.f32 %v3097_v54, %v3096_v53 }
0x1fc4   :  { %v3099_v56 = vrot.slane %v3098_v55, 2 }
0x1fc6   :  { %v3100_v57 = vadd.f32 %v3099_v56, %v3098_v55 }
0x1fc8   :  { %v3101_v58 = vrot.slane %v3100_v57, 1 }
0x1fca   :  { %v3102_v59 = vadd.f32 %v3101_v58, %v3100_v57 }
0x1fcc   :  { %3987 = vpush %v3102_v59 }
0x1ffd   :  { %s3988_s0 = spop %3987 }
0x1ffe   :  { %v3104_v60 = vstv %s3988_s0 }
0x1fff   :  { %4035 = vrcp.f32 %v3104_v60 }
0x2009   :  { %v4036_v62 = vpop.eup %4035 }
0x200a   :  { %v3106_v63 = vmul.f32 %v4036_v62, %v4034_v15 }
0x200c   :  { %v3107_v0 = vmul.f32 %v3106_v63, %v4708_v61 }
0x200e   :  { %v3108_v1 = vsel %vm2549_vm5, %v3107_v0, 0.0 }
0x200f   :  { %3109 = vadd.xlane.f32.xlu1 %v3108_v1 }
0x209c   :  { %v3110_v2 = vpop.xlane.xlu1 %3109 }
0x209d   :  { %v3111_v3 = vrot.slane %v3110_v2, 4 }
0x209f   :  { %v3112_v4 = vadd.f32 %v3111_v3, %v3110_v2 }
0x20a1   :  { %v3113_v7 = vrot.slane %v3112_v4, 2 }
0x20a3   :  { %v3114_v9 = vadd.f32 %v3113_v7, %v3112_v4 }
0x20a5   :  { %v3115_v10 = vrot.slane %v3114_v9, 1 }
0x20a7   :  { %v3116_v12 = vadd.f32 %v3115_v10, %v3114_v9 }
0x20a9   :  { %3989 = vpush %v3116_v12 }
0x20da   :  { %s3990_s8 = spop %3989 }
0x20db   :  { %v3118_v13 = vstv %s3990_s8 }
0x20dc   :  { %4037 = vrcp.f32 %v3118_v13 }
0x20e6   :  { %v4038_v14 = vpop.eup %4037 }
0x20e7   :  { %v3120_v17 = vmul.f32 %v4038_v14, %v3107_v0 }
0x20e9   :  { %vm3121_vm10 = vcmp.gt.f32.partialorder %v3120_v17, 0.0  ;;  %3139 = vst.msk [vmem:[%s4801_s20] sm:$0xff] %vm2549_vm5, %v3120_v17  ;;  %s4069_s20 = smov [#allocation2]  }
0x20ea   :  { %v3122_v61 = vsel %vm3121_vm10, %v3120_v17, 1.0  ;;  %s3155_s1 = sshll.u32 %s4069_s20, 4  ;;  %s3156_s1 = int_to_ptr.vmem [resolvable:$true] %s3155_s1 }
0x20eb   :  { %4039 = vlog2.f32 %v3122_v61  ;;  %s4045_s5 = scalar_lea.vmem %s3156_s1, 32  ;;  %p4046_p2 = scmp.lt.s32.totalorder %s3156_s1, %s3156_s1 }
0x20f5   :  { %v4040_v18 = vpop.eup %4039 }
0x20f6   :  { %v3124_v16 = vmul.f32 0.6931472, %v4040_v18 }
0x20f8   :  { %v3126_v20 = vmul.f32 %v3124_v16, %v3120_v17  ;;  %v3125_v8 = vsel %vm3121_vm10, %v3124_v16, -inf }
0x20f9   :  { %3140 = vst.msk [vmem:[%s4802_s21] sm:$0xff] %vm2549_vm5, %v3125_v8  ;;  %s4041_s21 = scalar_lea.vmem %s3156_s1, 16 }
0x20fa   :  { %v3127_v21 = vsel %vm3121_vm10, %v3126_v20, 0.0  ;;  %p4042_p1 = scmp.ne.s32.totalorder %s3156_s1, %s4041_s21  ;;  %p4047_p3 = scmp.lt.s32.totalorder %s4045_s5, %s4041_s21 }
0x20fb   :  { %v3128_v22 = vsel %vm2549_vm5, %v3127_v21, 0.0 }
0x20fc   :  { %3129 = vadd.xlane.f32.xlu1 %v3128_v22  ;;  %p4048_p4 = por %p4047_p3, %p4046_p2 }
0x20fe   :  { %p4049_p5 = pnand %p4048_p4, %p4042_p1 }
0x2189   :  { %v3130_v23 = vpop.xlane.xlu1 %3129 }
0x218a   :  { %v3131_v24 = vrot.slane %v3130_v23, 4 }
0x218c   :  { %v3132_v6 = vadd.f32 %v3131_v24, %v3130_v23 }
0x218e   :  { %v3133_v25 = vrot.slane %v3132_v6, 2 }
0x2190   :  { %v3134_v26 = vadd.f32 %v3133_v25, %v3132_v6 }
0x2192   :  { %v3135_v27 = vrot.slane %v3134_v26, 1 }
0x2194   :  { %v3136_v28 = vadd.f32 %v3135_v27, %v3134_v26 }
0x2196   :  { %3991 = vpush %v3136_v28 }
0x21c7   :  { %s3992_s3 = spop %3991 }
0x21c8   :  { %s3138_s17 = ssub.f32 0.0, %s3992_s3 }
0x21ca   :  { %v3141_v29 = vstv %s3138_s17 }
0x21cb   :  { %3144 = vst.msk [vmem:[#allocation2] sm:$0x1] %vm3143_vm11, %v3141_v29 }
0x21cc   :  { %4052 = shalt.err (!%p4049_p5)
}
0x21cd   :  { %s4829_s16 = sld [smem:[#allocation12_spill]] }
0x21d3   :  { %s4053_s27 = scalar_lea.hbm %s4829_s16, 16 }
0x21d4   :  { %p4054_p6 = scmp.ne.s32.totalorder %s4829_s16, %s4053_s27  ;;  %p4057_p7 = scmp.lt.u32.totalorder %s4053_s27, %s4829_s16 }
0x21d6   :  { %p4059_p8 = pnand %p4057_p7, %p4054_p6 }
0x21d8   :  { %4062 = shalt.err (!%p4059_p8)
}
0x21d9   :  { %3158 = dma.vmem_to_hbm [thread:$0]  %s3156_s1, 16, %s4829_s16, [#allocation3]  }
0x21da   :  { %4063 = dma.done.wait [#allocation3], 16  }
0x21db   :  { %4064 = vsyncadd [#allocation3], 4294967280 }
0x21dc   :  { %3166 = vsyncpa [#allocation3], 1 }

</bundles_post_ra>
